<compile_context>
chip_gen: v5e
topology: v5e:2x2
jax: 0.10.0
libtpu: 0.0.40
codegen_flags: <defaults>
</compile_context>

<pallas_src>
import math
from functools import partial

import jax
import jax.numpy as jnp
from jax.experimental import pallas as pl
from jax.experimental.pallas import tpu as pltpu


def _merge_attention_kernel(x_ref, A_ref, xs_ref,
                            wq_ref, wkv_ref, wproj_ref, bproj_ref,
                            gamma_ref, beta_ref,
                            out_ref,
                            k_scratch, v_scratch,
                            *, num_heads, ln_eps):
    C = x_ref.shape[-1]
    M = A_ref.shape[1]
    H = num_heads
    d = C // H
    bf16 = jnp.bfloat16

    # ---- once per batch element (query-tile 0): build head-major K/V ----
    @pl.when(pl.program_id(1) == 0)
    def _build_kv():
        A = A_ref[0]                                   # (M, S) f32
        xs = xs_ref[0]                                 # (S, C) f32
        # token downup: normalize AFTER the matmul (row scaling commutes),
        # so we take M reciprocals instead of M*S divides.
        rowsum = jnp.sum(A, axis=-1, keepdims=True)    # (M, 1) f32
        x_source = jnp.dot(A.astype(bf16), xs.astype(bf16),
                           preferred_element_type=jnp.float32)     # (M, C) f32
        x_source = x_source * pl.reciprocal(rowsum + 1e-6, approx=False)

        # LayerNorm (eps=1e-5) + exact-erf GELU, all in f32 (v5e: no bf16 VPU/EUP)
        mean = jnp.mean(x_source, axis=-1, keepdims=True)
        var = jnp.mean((x_source - mean) ** 2, axis=-1, keepdims=True)
        xn = (x_source - mean) * jax.lax.rsqrt(var + ln_eps)
        xn = xn * gamma_ref[...] + beta_ref[...]
        xg = 0.5 * xn * (1.0 + jax.lax.erf(xn * (1.0 / math.sqrt(2.0))))

        kv = jnp.dot(xg.astype(bf16), wkv_ref[...],
                     preferred_element_type=jnp.float32)           # (M, 2C) f32
        # store K/V head-major so per-tile attention needs no relayout
        k_scratch[...] = kv[:, :C].reshape(M, H, d).transpose(1, 0, 2).astype(bf16)
        v_scratch[...] = kv[:, C:].reshape(M, H, d).transpose(1, 0, 2).astype(bf16)

    # ---- per query tile ----
    x = x_ref[0]                                                   # (TQ, C) f32
    tq = x.shape[0]
    # Wq already carries the 1/sqrt(d) scale (folded in the glue)
    q = jnp.dot(x.astype(bf16), wq_ref[...],
                preferred_element_type=jnp.float32)                # (TQ, C) f32
    qh = q.reshape(tq, H, d).transpose(1, 0, 2).astype(bf16)       # (H, TQ, d)

    # batched per-head attention: single dot_general, heads as batch dim
    s = jax.lax.dot_general(qh, k_scratch[...],
                            (((2,), (2,)), ((0,), (0,))),
                            preferred_element_type=jnp.float32)    # (H, TQ, M)
    s = s - jnp.max(s, axis=-1, keepdims=True)
    e = jnp.exp(s)
    p = e * pl.reciprocal(jnp.sum(e, axis=-1, keepdims=True), approx=True)
    o = jax.lax.dot_general(p.astype(bf16), v_scratch[...],
                            (((2,), (1,)), ((0,), (0,))),
                            preferred_element_type=jnp.float32)    # (H, TQ, d)
    o = o.transpose(1, 0, 2).reshape(tq, C)                        # (TQ, C)

    out = jnp.dot(o.astype(bf16), wproj_ref[...],
                  preferred_element_type=jnp.float32) + bproj_ref[...]
    out_ref[0] = out.astype(out_ref.dtype)


def _pick_block_q(n, preferred=128):
    """Largest query tile <= preferred that divides n and is a multiple of 8."""
    if n <= preferred:
        return n
    for tq in (preferred, 512, 256, 128, 64, 32, 16, 8):
        if tq <= n and n % tq == 0 and tq % 8 == 0:
            return tq
    return n  # block == full dim is always legal


def merge_attention(params, x, A, x_src, *, num_heads, block_q=128):
    """x: (B, N, C) target tokens; A: (B, M, S) downup weights; x_src: (B, S, C)."""
    B, N, C = x.shape
    M, S = A.shape[1], A.shape[2]
    assert C % num_heads == 0
    d = C // num_heads
    scale = d ** (-0.5)

    tq = _pick_block_q(N, block_q)
    nq = N // tq

    # Fold the attention scale into Wq; store static weights as bf16 in HBM
    # (halves weight DMA + VMEM); bias / LN params stay f32.
    wq = (params["wq"] * scale).astype(jnp.bfloat16)
    wkv = params["wkv"].astype(jnp.bfloat16)
    wproj = params["wproj"].astype(jnp.bfloat16)
    bproj = params["bproj"].astype(jnp.float32)
    gamma = params["gamma"].astype(jnp.float32)
    beta = params["beta"].astype(jnp.float32)

    kernel = partial(_merge_attention_kernel, num_heads=num_heads, ln_eps=1e-5)

    return pl.pallas_call(
        kernel,
        out_shape=jax.ShapeDtypeStruct((B, N, C), jnp.float32),
        grid=(B, nq),
        in_specs=[
            pl.BlockSpec((1, tq, C), lambda b, q: (b, q, 0)),    # x (query tile)
            pl.BlockSpec((1, M, S), lambda b, q: (b, 0, 0)),     # A (reused over q)
            pl.BlockSpec((1, S, C), lambda b, q: (b, 0, 0)),     # x_src (reused)
            pl.BlockSpec((C, C), lambda b, q: (0, 0)),           # Wq^T * scale (bf16)
            pl.BlockSpec((C, 2 * C), lambda b, q: (0, 0)),       # Wkv^T (bf16)
            pl.BlockSpec((C, C), lambda b, q: (0, 0)),           # Wproj^T (bf16)
            pl.BlockSpec((1, C), lambda b, q: (0, 0)),           # proj bias
            pl.BlockSpec((1, C), lambda b, q: (0, 0)),           # LN gamma
            pl.BlockSpec((1, C), lambda b, q: (0, 0)),           # LN beta
        ],
        out_specs=pl.BlockSpec((1, tq, C), lambda b, q: (b, q, 0)),
        scratch_shapes=[
            pltpu.VMEM((num_heads, M, d), jnp.bfloat16),         # K, head-major
            pltpu.VMEM((num_heads, M, d), jnp.bfloat16),         # V, head-major
        ],
        compiler_params=pltpu.CompilerParams(
            # batch axis parallel (megacore); query-tile axis arbitrary so the
            # K/V scratch built at tile 0 is valid for the remaining tiles.
            dimension_semantics=("parallel", "arbitrary"),
            vmem_limit_bytes=48 * 1024 * 1024,   # explicit budget (fits v7x 64 MiB)
        ),
    )(x, A, x_src, wq, wkv, wproj, bproj, gamma, beta)


def build_downup_matrix(target_dict, source_dict):
    """Dense equivalent of tcformer token_downup's sparse aggregation matrix.

    A[b, t, s] = sum of agg weights of initial-grid points mapped to target
    token t and source token s.  Row-normalization happens inside the kernel.
    """
    # TODO(synk): original `downup` uses torch.sparse; reproduced densely here
    # (a scalar-prefetch segment-sum inside the kernel would avoid densifying).
    x_t = target_dict["x"]
    x_s = source_dict["x"]
    idx_t = target_dict["idx_token"]        # (B, N_init) in [0, T)
    idx_s = source_dict["idx_token"]        # (B, N_init) in [0, S)
    B, S, _ = x_s.shape
    T = x_t.shape[1]
    n_init = idx_t.shape[1]
    w = target_dict.get("agg_weight",
                        jnp.ones((B, n_init, 1), jnp.float32))[..., 0]   # (B, N_init)
    A = jnp.zeros((B, T, S), jnp.float32)
    A = A.at[jnp.arange(B)[:, None], idx_t, idx_s].add(w.astype(jnp.float32))
    return A


def init_params(key, dim):
    # trunc_normal(std=0.02) for Linear weights, zero bias, LN gamma=1 beta=0.
    k1, k2, k3 = jax.random.split(key, 3)
    std = 0.02
    return {
        "wq": std * jax.random.truncated_normal(k1, -2.0, 2.0, (dim, dim), jnp.float32),
        "wkv": std * jax.random.truncated_normal(k2, -2.0, 2.0, (dim, 2 * dim), jnp.float32),
        "wproj": std * jax.random.truncated_normal(k3, -2.0, 2.0, (dim, dim), jnp.float32),
        "bproj": jnp.zeros((1, dim), jnp.float32),
        "gamma": jnp.ones((1, dim), jnp.float32),
        "beta": jnp.zeros((1, dim), jnp.float32),
    }


def merge_attention_forward(params, tar_dict, gather_dict, src_dict=None, *,
                            num_heads, block_q=128):
    x = tar_dict["x"]
    if src_dict is None:
        src_dict = tar_dict
    # x_source = downup(gather_dict, src_dict): aggregation matrix built in glue,
    # normalization + matmul fused into the Pallas kernel.
    A = build_downup_matrix(gather_dict, src_dict)          # (B, M, S)
    return merge_attention(params, x, A, src_dict["x"],
                           num_heads=num_heads, block_q=block_q)


if __name__ == "__main__":
    key = jax.random.PRNGKey(0)
    kp, kx, kg, ki, kw = jax.random.split(key, 5)

    B, C, num_heads = 2, 128, 4   # C=128 keeps output stores lane-dense
    N = 64        # target (= source, src_dict is None) token count
    M = 16        # gathered / merged token count
    N_INIT = 64   # initial grid points

    params = init_params(kp, C)

    tar_dict = {
        "x": jax.random.normal(kx, (B, N, C), jnp.float32),
        "idx_token": jnp.tile(jnp.arange(N, dtype=jnp.int32)[None, :], (B, 1)),
        "token_num": N,
    }
    gather_dict = {
        "x": jax.random.normal(kg, (B, M, C), jnp.float32),
        "idx_token": jax.random.randint(ki, (B, N_INIT), 0, M, dtype=jnp.int32),
        "agg_weight": jax.nn.softplus(
            jax.random.normal(kw, (B, N_INIT, 1), jnp.float32)),
        "token_num": M,
    }

    # block_q=32 -> 2 query tiles per batch element, exercising the tiled grid
    # and the once-per-batch K/V scratch path.
    out = merge_attention_forward(params, tar_dict, gather_dict, None,
                                  num_heads=num_heads, block_q=32)
    out = jax.block_until_ready(out)
    assert out.shape == (B, N, C) and out.dtype == jnp.float32
    assert bool(jnp.all(jnp.isfinite(out)))
    print("KERNEL_OK")
</pallas_src>

<mosaic_0001>
module attributes {stable_mosaic.version = 11 : i64} {
  func.func @_merge_attention_kernel(%arg0: i32, %arg1: i32, %arg2: memref<1x32x128xf32, #tpu.memory_space<vmem>>, %arg3: memref<1x16x64xf32, #tpu.memory_space<vmem>>, %arg4: memref<1x64x128xf32, #tpu.memory_space<vmem>>, %arg5: memref<128x128xbf16, #tpu.memory_space<vmem>>, %arg6: memref<128x256xbf16, #tpu.memory_space<vmem>>, %arg7: memref<128x128xbf16, #tpu.memory_space<vmem>>, %arg8: memref<1x128xf32, #tpu.memory_space<vmem>>, %arg9: memref<1x128xf32, #tpu.memory_space<vmem>>, %arg10: memref<1x128xf32, #tpu.memory_space<vmem>>, %arg11: memref<1x32x128xf32, #tpu.memory_space<vmem>>, %arg12: memref<4x16x32xbf16, #tpu.memory_space<vmem>>, %arg13: memref<4x16x32xbf16, #tpu.memory_space<vmem>>) attributes {dimension_semantics = [#tpu.dimension_semantics<parallel>, #tpu.dimension_semantics<arbitrary>], iteration_bounds = array<i64: 2, 2>, scalar_prefetch = 0 : i64, scratch_operands = 2 : i64, tpu.core_type = #tpu.core_type<tc>, window_params = [{transform_indices = @transform_0, window_bounds = array<i64: 1, 32, 128>}, {transform_indices = @transform_1, window_bounds = array<i64: 1, 16, 64>}, {transform_indices = @transform_2, window_bounds = array<i64: 1, 64, 128>}, {pipeline_mode = #tpu.pipeline_mode<synchronous>, transform_indices = @transform_3, window_bounds = array<i64: 128, 128>}, {pipeline_mode = #tpu.pipeline_mode<synchronous>, transform_indices = @transform_4, window_bounds = array<i64: 128, 256>}, {pipeline_mode = #tpu.pipeline_mode<synchronous>, transform_indices = @transform_5, window_bounds = array<i64: 128, 128>}, {pipeline_mode = #tpu.pipeline_mode<synchronous>, transform_indices = @transform_6, window_bounds = array<i64: 1, 128>}, {pipeline_mode = #tpu.pipeline_mode<synchronous>, transform_indices = @transform_7, window_bounds = array<i64: 1, 128>}, {pipeline_mode = #tpu.pipeline_mode<synchronous>, transform_indices = @transform_8, window_bounds = array<i64: 1, 128>}, {transform_indices = @transform_9, window_bounds = array<i64: 1, 32, 128>}]} {
    %c0_i32 = arith.constant 0 : i32
    %0 = arith.cmpi eq, %arg1, %c0_i32 : i32
    %1 = arith.extui %0 : i1 to i32
    %c0_i32_0 = arith.constant 0 : i32
    %2 = arith.cmpi ne, %1, %c0_i32_0 : i32
    scf.if %2 {
      %c0_23 = arith.constant 0 : index
      %c0_24 = arith.constant 0 : index
      %c0_25 = arith.constant 0 : index
      %37 = vector.load %arg3[%c0_23, %c0_24, %c0_25] : memref<1x16x64xf32, #tpu.memory_space<vmem>>, vector<1x16x64xf32>
      %38 = vector.shape_cast %37 : vector<1x16x64xf32> to vector<16x64xf32>
      %c0_26 = arith.constant 0 : index
      %c0_27 = arith.constant 0 : index
      %c0_28 = arith.constant 0 : index
      %39 = vector.load %arg4[%c0_26, %c0_27, %c0_28] : memref<1x64x128xf32, #tpu.memory_space<vmem>>, vector<1x64x128xf32>
      %40 = vector.shape_cast %39 : vector<1x64x128xf32> to vector<64x128xf32>
      %cst_29 = arith.constant dense<0.000000e+00> : vector<16xf32>
      %41 = vector.multi_reduction <add>, %38, %cst_29 [1] : vector<16x64xf32> to vector<16xf32>
      %42 = vector.shape_cast %41 : vector<16xf32> to vector<16x1xf32>
      %43 = arith.truncf %38 : vector<16x64xf32> to vector<16x64xbf16>
      %44 = arith.truncf %40 : vector<64x128xf32> to vector<64x128xbf16>
      %cst_30 = arith.constant dense<0.000000e+00> : vector<16x128xf32>
      %45 = tpu.matmul %43, %44, %cst_30 {dimension_numbers = #tpu.dot_dimension_numbers<[1], [0], [0], [1], [0, 0, 1, 1], [], []>} : vector<16x64xbf16>, vector<64x128xbf16>, vector<16x128xf32> -> vector<16x128xf32>
      %cst_31 = arith.constant 9.99999997E-7 : f32
      %46 = vector.broadcast %cst_31 : f32 to vector<16x1xf32>
      %47 = arith.addf %42, %46 : vector<16x1xf32>
      %48 = tpu.reciprocal %47 : vector<16x1xf32> -> vector<16x1xf32>
      %49 = vector.broadcast %48 : vector<16x1xf32> to vector<16x128xf32>
      %50 = arith.mulf %45, %49 : vector<16x128xf32>
      %cst_32 = arith.constant dense<0.000000e+00> : vector<16xf32>
      %51 = vector.multi_reduction <add>, %50, %cst_32 [1] : vector<16x128xf32> to vector<16xf32>
      %52 = vector.shape_cast %51 : vector<16xf32> to vector<16x1xf32>
      %cst_33 = arith.constant 1.280000e+02 : f32
      %53 = vector.broadcast %cst_33 : f32 to vector<16x1xf32>
      %54 = arith.divf %52, %53 : vector<16x1xf32>
      %55 = vector.broadcast %54 : vector<16x1xf32> to vector<16x128xf32>
      %56 = arith.subf %50, %55 : vector<16x128xf32>
      %57 = arith.mulf %56, %56 : vector<16x128xf32>
      %cst_34 = arith.constant dense<0.000000e+00> : vector<16xf32>
      %58 = vector.multi_reduction <add>, %57, %cst_34 [1] : vector<16x128xf32> to vector<16xf32>
      %59 = vector.shape_cast %58 : vector<16xf32> to vector<16x1xf32>
      %cst_35 = arith.constant 1.280000e+02 : f32
      %60 = vector.broadcast %cst_35 : f32 to vector<16x1xf32>
      %61 = arith.divf %59, %60 : vector<16x1xf32>
      %62 = vector.broadcast %54 : vector<16x1xf32> to vector<16x128xf32>
      %63 = arith.subf %50, %62 : vector<16x128xf32>
      %cst_36 = arith.constant 9.99999974E-6 : f32
      %64 = vector.broadcast %cst_36 : f32 to vector<16x1xf32>
      %65 = arith.addf %61, %64 : vector<16x1xf32>
      %66 = math.rsqrt %65 : vector<16x1xf32>
      %67 = vector.broadcast %66 : vector<16x1xf32> to vector<16x128xf32>
      %68 = arith.mulf %63, %67 : vector<16x128xf32>
      %c0_37 = arith.constant 0 : index
      %c0_38 = arith.constant 0 : index
      %69 = vector.load %arg9[%c0_37, %c0_38] : memref<1x128xf32, #tpu.memory_space<vmem>>, vector<1x128xf32>
      %70 = vector.broadcast %69 : vector<1x128xf32> to vector<16x128xf32>
      %71 = arith.mulf %68, %70 : vector<16x128xf32>
      %c0_39 = arith.constant 0 : index
      %c0_40 = arith.constant 0 : index
      %72 = vector.load %arg10[%c0_39, %c0_40] : memref<1x128xf32, #tpu.memory_space<vmem>>, vector<1x128xf32>
      %73 = vector.broadcast %72 : vector<1x128xf32> to vector<16x128xf32>
      %74 = arith.addf %71, %73 : vector<16x128xf32>
      %cst_41 = arith.constant 5.000000e-01 : f32
      %75 = vector.broadcast %cst_41 : f32 to vector<16x128xf32>
      %76 = arith.mulf %75, %74 : vector<16x128xf32>
      %cst_42 = arith.constant 0.707106769 : f32
      %77 = vector.broadcast %cst_42 : f32 to vector<16x128xf32>
      %78 = arith.mulf %74, %77 : vector<16x128xf32>
      %79 = math.erf %78 : vector<16x128xf32>
      %cst_43 = arith.constant 1.000000e+00 : f32
      %80 = vector.broadcast %cst_43 : f32 to vector<16x128xf32>
      %81 = arith.addf %80, %79 : vector<16x128xf32>
      %82 = arith.mulf %76, %81 : vector<16x128xf32>
      %83 = arith.truncf %82 : vector<16x128xf32> to vector<16x128xbf16>
      %c0_44 = arith.constant 0 : index
      %c0_45 = arith.constant 0 : index
      %84 = vector.load %arg6[%c0_44, %c0_45] : memref<128x256xbf16, #tpu.memory_space<vmem>>, vector<128x256xbf16>
      %cst_46 = arith.constant dense<0.000000e+00> : vector<16x256xf32>
      %85 = tpu.matmul %83, %84, %cst_46 {dimension_numbers = #tpu.dot_dimension_numbers<[1], [0], [0], [1], [0, 0, 1, 1], [], []>} : vector<16x128xbf16>, vector<128x256xbf16>, vector<16x256xf32> -> vector<16x256xf32>
      %86 = vector.extract_strided_slice %85 {offsets = [0, 0], sizes = [16, 128], strides = [1, 1]} : vector<16x256xf32> to vector<16x128xf32>
      %87 = vector.shape_cast %86 : vector<16x128xf32> to vector<16x4x32xf32>
      %88 = tpu.transpose %87, [1, 0, 2] : vector<16x4x32xf32> -> vector<4x16x32xf32>
      %89 = arith.truncf %88 : vector<4x16x32xf32> to vector<4x16x32xbf16>
      %c0_47 = arith.constant 0 : index
      %c0_48 = arith.constant 0 : index
      %c0_49 = arith.constant 0 : index
      %90 = vector.load %arg12[%c0_47, %c0_48, %c0_49] : memref<4x16x32xbf16, #tpu.memory_space<vmem>>, vector<4x16x32xbf16>
      tpu.vector_store %arg12[%c0_47, %c0_48, %c0_49], %89 {strides = array<i32>} : memref<4x16x32xbf16, #tpu.memory_space<vmem>>, vector<4x16x32xbf16>,
      %91 = vector.extract_strided_slice %85 {offsets = [0, 128], sizes = [16, 128], strides = [1, 1]} : vector<16x256xf32> to vector<16x128xf32>
      %92 = vector.shape_cast %91 : vector<16x128xf32> to vector<16x4x32xf32>
      %93 = tpu.transpose %92, [1, 0, 2] : vector<16x4x32xf32> -> vector<4x16x32xf32>
      %94 = arith.truncf %93 : vector<4x16x32xf32> to vector<4x16x32xbf16>
      %c0_50 = arith.constant 0 : index
      %c0_51 = arith.constant 0 : index
      %c0_52 = arith.constant 0 : index
      %95 = vector.load %arg13[%c0_50, %c0_51, %c0_52] : memref<4x16x32xbf16, #tpu.memory_space<vmem>>, vector<4x16x32xbf16>
      tpu.vector_store %arg13[%c0_50, %c0_51, %c0_52], %94 {strides = array<i32>} : memref<4x16x32xbf16, #tpu.memory_space<vmem>>, vector<4x16x32xbf16>,
    } else {
    }
    %c0 = arith.constant 0 : index
    %c0_1 = arith.constant 0 : index
    %c0_2 = arith.constant 0 : index
    %3 = vector.load %arg2[%c0, %c0_1, %c0_2] : memref<1x32x128xf32, #tpu.memory_space<vmem>>, vector<1x32x128xf32>
    %4 = vector.shape_cast %3 : vector<1x32x128xf32> to vector<32x128xf32>
    %5 = arith.truncf %4 : vector<32x128xf32> to vector<32x128xbf16>
    %c0_3 = arith.constant 0 : index
    %c0_4 = arith.constant 0 : index
    %6 = vector.load %arg5[%c0_3, %c0_4] : memref<128x128xbf16, #tpu.memory_space<vmem>>, vector<128x128xbf16>
    %cst = arith.constant dense<0.000000e+00> : vector<32x128xf32>
    %7 = tpu.matmul %5, %6, %cst {dimension_numbers = #tpu.dot_dimension_numbers<[1], [0], [0], [1], [0, 0, 1, 1], [], []>} : vector<32x128xbf16>, vector<128x128xbf16>, vector<32x128xf32> -> vector<32x128xf32>
    %8 = vector.shape_cast %7 : vector<32x128xf32> to vector<32x4x32xf32>
    %9 = tpu.transpose %8, [1, 0, 2] : vector<32x4x32xf32> -> vector<4x32x32xf32>
    %10 = arith.truncf %9 : vector<4x32x32xf32> to vector<4x32x32xbf16>
    %c0_5 = arith.constant 0 : index
    %c0_6 = arith.constant 0 : index
    %c0_7 = arith.constant 0 : index
    %11 = vector.load %arg12[%c0_5, %c0_6, %c0_7] : memref<4x16x32xbf16, #tpu.memory_space<vmem>>, vector<4x16x32xbf16>
    %cst_8 = arith.constant dense<0.000000e+00> : vector<4x32x16xf32>
    %12 = tpu.matmul %10, %11, %cst_8 {dimension_numbers = #tpu.dot_dimension_numbers<[2], [2], [1], [1], [0, 0, 0, 1, 1, 1], [0], [0]>} : vector<4x32x32xbf16>, vector<4x16x32xbf16>, vector<4x32x16xf32> -> vector<4x32x16xf32>
    %cst_9 = arith.constant dense<0xFF800000> : vector<4x32xf32>
    %13 = vector.multi_reduction <maximumf>, %12, %cst_9 [2] : vector<4x32x16xf32> to vector<4x32xf32>
    %14 = vector.shape_cast %13 : vector<4x32xf32> to vector<4x32x1xf32>
    %15 = vector.broadcast %14 : vector<4x32x1xf32> to vector<4x32x16xf32>
    %16 = arith.subf %12, %15 : vector<4x32x16xf32>
    %17 = math.exp %16 : vector<4x32x16xf32>
    %cst_10 = arith.constant dense<0.000000e+00> : vector<4x32xf32>
    %18 = vector.multi_reduction <add>, %17, %cst_10 [2] : vector<4x32x16xf32> to vector<4x32xf32>
    %19 = vector.shape_cast %18 : vector<4x32xf32> to vector<4x32x1xf32>
    %20 = tpu.reciprocal %19 {approx = true} : vector<4x32x1xf32> -> vector<4x32x1xf32>
    %21 = vector.broadcast %20 : vector<4x32x1xf32> to vector<4x32x16xf32>
    %22 = arith.mulf %17, %21 : vector<4x32x16xf32>
    %23 = arith.truncf %22 : vector<4x32x16xf32> to vector<4x32x16xbf16>
    %c0_11 = arith.constant 0 : index
    %c0_12 = arith.constant 0 : index
    %c0_13 = arith.constant 0 : index
    %24 = vector.load %arg13[%c0_11, %c0_12, %c0_13] : memref<4x16x32xbf16, #tpu.memory_space<vmem>>, vector<4x16x32xbf16>
    %cst_14 = arith.constant dense<0.000000e+00> : vector<4x32x32xf32>
    %25 = tpu.matmul %23, %24, %cst_14 {dimension_numbers = #tpu.dot_dimension_numbers<[2], [1], [1], [2], [0, 0, 0, 1, 1, 2], [0], [0]>} : vector<4x32x16xbf16>, vector<4x16x32xbf16>, vector<4x32x32xf32> -> vector<4x32x32xf32>
    %26 = tpu.transpose %25, [1, 0, 2] : vector<4x32x32xf32> -> vector<32x4x32xf32>
    %27 = vector.shape_cast %26 : vector<32x4x32xf32> to vector<32x128xf32>
    %28 = arith.truncf %27 : vector<32x128xf32> to vector<32x128xbf16>
    %c0_15 = arith.constant 0 : index
    %c0_16 = arith.constant 0 : index
    %29 = vector.load %arg7[%c0_15, %c0_16] : memref<128x128xbf16, #tpu.memory_space<vmem>>, vector<128x128xbf16>
    %cst_17 = arith.constant dense<0.000000e+00> : vector<32x128xf32>
    %30 = tpu.matmul %28, %29, %cst_17 {dimension_numbers = #tpu.dot_dimension_numbers<[1], [0], [0], [1], [0, 0, 1, 1], [], []>} : vector<32x128xbf16>, vector<128x128xbf16>, vector<32x128xf32> -> vector<32x128xf32>
    %c0_18 = arith.constant 0 : index
    %c0_19 = arith.constant 0 : index
    %31 = vector.load %arg8[%c0_18, %c0_19] : memref<1x128xf32, #tpu.memory_space<vmem>>, vector<1x128xf32>
    %32 = vector.broadcast %31 : vector<1x128xf32> to vector<32x128xf32>
    %33 = arith.addf %30, %32 : vector<32x128xf32>
    %c0_20 = arith.constant 0 : index
    %c0_21 = arith.constant 0 : index
    %c0_22 = arith.constant 0 : index
    %34 = vector.load %arg11[%c0_20, %c0_21, %c0_22] : memref<1x32x128xf32, #tpu.memory_space<vmem>>, vector<1x32x128xf32>
    %35 = vector.shape_cast %34 : vector<1x32x128xf32> to vector<32x128xf32>
    %36 = vector.shape_cast %33 : vector<32x128xf32> to vector<1x32x128xf32>
    tpu.vector_store %arg11[%c0_20, %c0_21, %c0_22], %36 {strides = array<i32>} : memref<1x32x128xf32, #tpu.memory_space<vmem>>, vector<1x32x128xf32>,
    return
  }
  func.func @transform_0(%arg0: i32, %arg1: i32) -> (i32, i32, i32) {
    %c0_i32 = arith.constant 0 : i32
    %c0_i32_0 = arith.constant 0 : i32
    return %arg0, %arg1, %c0_i32 : i32, i32, i32
  }
  func.func @transform_1(%arg0: i32, %arg1: i32) -> (i32, i32, i32) {
    %c0_i32 = arith.constant 0 : i32
    %c0_i32_0 = arith.constant 0 : i32
    %c0_i32_1 = arith.constant 0 : i32
    return %arg0, %c0_i32, %c0_i32_0 : i32, i32, i32
  }
  func.func @transform_2(%arg0: i32, %arg1: i32) -> (i32, i32, i32) {
    %c0_i32 = arith.constant 0 : i32
    %c0_i32_0 = arith.constant 0 : i32
    %c0_i32_1 = arith.constant 0 : i32
    return %arg0, %c0_i32, %c0_i32_0 : i32, i32, i32
  }
  func.func @transform_3(%arg0: i32, %arg1: i32) -> (i32, i32) {
    %c0_i32 = arith.constant 0 : i32
    %c0_i32_0 = arith.constant 0 : i32
    %c0_i32_1 = arith.constant 0 : i32
    return %c0_i32, %c0_i32_0 : i32, i32
  }
  func.func @transform_4(%arg0: i32, %arg1: i32) -> (i32, i32) {
    %c0_i32 = arith.constant 0 : i32
    %c0_i32_0 = arith.constant 0 : i32
    %c0_i32_1 = arith.constant 0 : i32
    return %c0_i32, %c0_i32_0 : i32, i32
  }
  func.func @transform_5(%arg0: i32, %arg1: i32) -> (i32, i32) {
    %c0_i32 = arith.constant 0 : i32
    %c0_i32_0 = arith.constant 0 : i32
    %c0_i32_1 = arith.constant 0 : i32
    return %c0_i32, %c0_i32_0 : i32, i32
  }
  func.func @transform_6(%arg0: i32, %arg1: i32) -> (i32, i32) {
    %c0_i32 = arith.constant 0 : i32
    %c0_i32_0 = arith.constant 0 : i32
    %c0_i32_1 = arith.constant 0 : i32
    return %c0_i32, %c0_i32_0 : i32, i32
  }
  func.func @transform_7(%arg0: i32, %arg1: i32) -> (i32, i32) {
    %c0_i32 = arith.constant 0 : i32
    %c0_i32_0 = arith.constant 0 : i32
    %c0_i32_1 = arith.constant 0 : i32
    return %c0_i32, %c0_i32_0 : i32, i32
  }
  func.func @transform_8(%arg0: i32, %arg1: i32) -> (i32, i32) {
    %c0_i32 = arith.constant 0 : i32
    %c0_i32_0 = arith.constant 0 : i32
    %c0_i32_1 = arith.constant 0 : i32
    return %c0_i32, %c0_i32_0 : i32, i32
  }
  func.func @transform_9(%arg0: i32, %arg1: i32) -> (i32, i32, i32) {
    %c0_i32 = arith.constant 0 : i32
    %c0_i32_0 = arith.constant 0 : i32
    return %arg0, %arg1, %c0_i32 : i32, i32, i32
  }
}

</mosaic_0001>

<bundles_post_ra>
// kernel: tpu_custom_call.1
= control target key start
LH: loop header
LB: loop body
LE: loop exit
PB: predicated region body
PF: predicated region fallthrough
CT: control target
= control target key end

     0   :  { %s5565_s0 = inlined_call_operand.hbm [shape: f32[2,64,128], index: 0, kind: input, shape index: {}]   ;;  %s5566_s1 = inlined_call_operand.hbm [shape: f32[2,16,64], index: 1, kind: input, shape index: {}]   ;;  %s5567_s2 = inlined_call_operand.hbm [shape: f32[2,64,128], index: 2, kind: input, shape index: {}]   ;;  %s5568_s3 = inlined_call_operand.hbm [shape: bf16[128,128], index: 3, kind: input, shape index: {}]   ;;  %s5569_s4 = inlined_call_operand.hbm [shape: bf16[128,256], index: 4, kind: input, shape index: {}]   ;;  %s5570_s5 = inlined_call_operand.hbm [shape: bf16[128,128], index: 5, kind: input, shape index: {}]   ;;  %s5571_s6 = inlined_call_operand.vmem [shape: f32[1,128], index: 6, kind: input, shape index: {}]   ;;  %s5572_s7 = inlined_call_operand.vmem [shape: f32[1,128], index: 7, kind: input, shape index: {}]   ;;  %s5573_s8 = inlined_call_operand.vmem [shape: f32[1,128], index: 8, kind: input, shape index: {}]   ;;  %s5574_s9 = inlined_call_operand.hbm [shape: f32[2,64,128], index: 9, kind: output, shape index: {}]  }
   0x1   :  { %5593 = sst [smem:[#allocation33_spill]] %s5566_s1 }
   0x2   :  { %5594 = sst [smem:[#allocation34_spill]] %s5568_s3 }
   0x3   :  { %5595 = sst [smem:[#allocation35_spill]] %s5569_s4 }
   0x4   :  { %5596 = sst [smem:[#allocation36_spill]] %s5570_s5 }
   0x5   :  { %5597 = sst [smem:[#allocation37_spill]] %s5571_s6 }
   0x6   :  { %5598 = sst [smem:[#allocation38_spill]] %s5572_s7 }
   0x7   :  { %5599 = sst [smem:[#allocation39_spill]] %s5573_s8 }
   0x8   :  { %5600 = sst [smem:[#allocation40_spill]] %s5574_s9 }
   0x9   :  { %14 = vsyncpa [#allocation5], 0 }
   0xa   :  { %16 = vsyncpa [#allocation5 + $0x1], 0 }
   0xb   :  { %17 = vsyncpa [#allocation8], 0 }
   0xc   :  { %19 = vsyncpa [#allocation8 + $0x1], 0 }
   0xd   :  { %20 = vsyncpa [#allocation11], 0 }
   0xe   :  { %21 = vsyncpa [#allocation14], 0 }
   0xf   :  { %22 = vsyncpa [#allocation6], 0 }
  0x10   :  { %24 = vsyncpa [#allocation6 + $0x1], 0  ;;  %s4244_s30 = smov 0   ;;  %s4246_s10 = smov 0  }
  0x11   :  { %s4248_s11 = smov 0   ;;  %s4250_s12 = smov 0  }
  0x12   :  { %s4252_s13 = smov 0   ;;  %s4254_s14 = smov 0  }
  0x13   :  { %s4256_s15 = smov 0   ;;  %s4258_s16 = smov 0  }
  0x14   :  { %s4260_s17 = smov 0   ;;  %s4262_s18 = smov 0  }
  0x15   :  { %s4264_s19 = smov 0  }
  0x16 LB: > { %5601 = sst [smem:[#allocation21_spill]] %s4136_s10  ;;  %s4300_s20 = sadd.s32 4294967295, %s4172_s19   ;;  %s4172_s19 = sphi %s4264_s19, %s30_s19   ;;  %s4168_s18 = sphi %s4262_s18, %s5660_s18   ;;  %s4164_s17 = sphi %s4260_s17, %s5653_s17   ;;  %s4160_s16 = sphi %s4258_s16, %s5659_s16   ;;  %s4156_s15 = sphi %s4256_s15, %s5652_s15   ;;  %s4152_s14 = sphi %s4254_s14, %s5651_s14   ;;  %s4148_s13 = sphi %s4252_s13, %s5658_s13   ;;  %s4144_s12 = sphi %s4250_s12, %s5657_s12   ;;  %s4140_s11 = sphi %s4248_s11, %s5656_s11   ;;  %s4136_s10 = sphi %s4246_s10, %s5655_s10   ;;  %s4132_s30 = sphi %s4244_s30, %s5648_s30  }
  0x17   : > { %5602 = sst [smem:[#allocation22_spill]] %s4144_s12  ;;  %p3275_p0 = scmp.ge.s32.totalorder %s4172_s19, 1 }
  0x18   : > { %5603 = sst [smem:[#allocation23_spill]] %s4152_s14  ;;  %p5581_p1 = scmp.eq.s32.totalorder %s4300_s20, 0 }
  0x19   : > { %5604 = sst [smem:[#allocation24_spill]] %s4156_s15  ;;  %p268_p2 = scmp.eq.s32.totalorder %s4300_s20, 3 }
  0x1a   : > { %5605 = sst [smem:[#allocation25_spill]] %s4160_s16  ;;  %p281_p3 = scmp.lt.s32.totalorder %s4172_s19, 5 }
  0x1b   : > { %5606 = sst [smem:[#allocation26_spill]] %s4164_s17  ;;  %s4174_s25 = smov [#allocation10]  }
  0x1c   : > { %s5607_s3 = sld [smem:[#allocation34_spill]]  ;;  %p4309_p4 = pnand %p3275_p0, %p281_p3 }
  0x1d   : > { %s294_s26 = sshll.u32 %s4174_s25, 4  ;;  %s5576_s28 = smov 64   ;;  %s295_s26 = int_to_ptr.vmem [resolvable:$true] %s294_s26 }
  0x1e   : > { %p3547_p5 = pneg %p4309_p4  ;;  %s5577_s29 = smov 4  }
  0x1f   : > { %p59_p7 = scmp.eq.s32.totalorder %s4172_s19, 0  ;;  %p84_p8 = scmp.ne.s32.totalorder %s4140_s11, %s4136_s10 }
  0x20   : > { %p4317_p6 = pnand %p3547_p5, %p5581_p1  ;;  %p90_p9 = scmp.ne.s32.totalorder %s4136_s10, %s4132_s30 }
  0x21   : > { %p4334_p10 = por %p84_p8, %p59_p7  ;;  %p5582_p12 = scmp.lt.s32.totalorder %s4172_s19, 4 }
  0x22   : > { %s292_s23 = sshll.u32 %s5607_s3, 4  ;;  %p4340_p11 = por %p90_p9, %p5581_p1  ;;  %s293_s23 = int_to_ptr.hbm [resolvable:$true] %s292_s23 }
  0x23   : > { %3550 = dma.hbm_to_vmem [thread:$0]  (!%p4317_p6), %s293_s23, 1024, %s295_s26, [#allocation11], %s5576_s28, %s5576_s28, %s5577_s29  }
  0x24   : > { %s5611_s25 = scalar_select %p4340_p11, 1, 0 }
  0x25   : > { %s369_s3 = sand.u32 1, %s4172_s19   ;;  %s371_s9 = sand.u32 1, %s4140_s11  }
  0x26   : > { %5612 = sst [smem:[#allocation27_spill]] %s5611_s25  ;;  %s3284_s23 = sshll.u32 %s371_s9, 4 }
  0x27   : > { %s3484_s26 = sshll.u32 %s4168_s18, 4  ;;  %s5613_s1 = sld [smem:[#allocation33_spill]] }
  0x28   : > { %s373_s6 = scalar_lea.vmem [#allocation7], %s3284_s23  ;;  %p4355_p13 = pnand %p5582_p12, %p4334_p10 }
  0x29   : > { %s381_s16 = sshll.u32 %s373_s6, 4  ;;  %s3287_s7 = sshll.u32 %s371_s9, 6  ;;  %s382_s16 = int_to_ptr.vmem [resolvable:$true] %s381_s16 }
  0x2a   : > { %s5615_s4 = sld [smem:[#allocation35_spill]]  ;;  %s395_s28 = scalar_lea.vmem [#allocation9], %s3287_s7 }
  0x2b   : > { %s4362_s21 = sshll.u32 %s395_s28, 4  ;;  %s4364_s6 = scalar_lea.sflag [#allocation8], %s369_s3  ;;  %s404_s21 = int_to_ptr.vmem [resolvable:$true] %s4362_s21 }
  0x2c   : > { %s5583_s22 = smov 128   ;;  %s5585_s23 = smov 8  }
  0x2d   : > { %s378_s30 = scalar_lea.hbm %s5613_s1, %s3484_s26  ;;  %s4179_s7 = smov [#allocation12]  }
  0x2e   : > { %s379_s29 = sshll.u32 %s378_s30, 4  ;;  %s308_s9 = sshll.u32 %s4179_s7, 4  ;;  %s380_s29 = int_to_ptr.hbm [resolvable:$true] %s379_s29  ;;  %s309_s9 = int_to_ptr.vmem [resolvable:$true] %s308_s9 }
  0x2f   : > { %3563 = dma.hbm_to_vmem [thread:$0]  (!%p4355_p13), %s380_s29, 256, %s382_s16, %s4364_s6, %s5583_s22, %s5583_s22, %s5585_s23  }
  0x30   : > { %s306_s10 = sshll.u32 %s5615_s4, 4  ;;  %s5616_s5 = sld [smem:[#allocation36_spill]]  ;;  %s307_s10 = int_to_ptr.hbm [resolvable:$true] %s306_s10 }
  0x31   : > { %3553 = dma.hbm_to_vmem [thread:$0]  (!%p4317_p6), %s307_s10, 2048, %s309_s9, [#allocation11], %s5583_s22, %s5583_s22, %s5585_s23  }
  0x32   : > { %s4180_s16 = smov [#allocation13]   ;;  %s5617_s26 = smov 4  }
  0x33   : > { %s322_s29 = sshll.u32 %s4180_s16, 4  ;;  %s5618_s30 = smov 64   ;;  %s323_s29 = int_to_ptr.vmem [resolvable:$true] %s322_s29 }
  0x34   : > { %s3274_s28 = sadd.s32 4294967294, %s4172_s19   ;;  %s39_s7 = sadd.s32 1, %s4164_s17 }
  0x35   : > { %s42_s3 = sadd.s32 1, %s4168_s18  ;;  %p40_p0 = scmp.ge.s32.totalorder %s39_s7, 2 }
  0x36   : > { %s320_s25 = sshll.u32 %s5616_s5, 4  ;;  %s51_s15 = sadd.s32 1, %s4152_s14  ;;  %s321_s25 = int_to_ptr.hbm [resolvable:$true] %s320_s25 }
  0x37   : > { %3556 = dma.hbm_to_vmem [thread:$0]  (!%p4317_p6), %s321_s25, 1024, %s323_s29, [#allocation14], %s5618_s30, %s5618_s30, %s5617_s26  }
  0x38   : > { %p58_p3 = scmp.ne.s32.totalorder %s4152_s14, %s4148_s13  ;;  %p64_p5 = scmp.ne.s32.totalorder %s4148_s13, %s4144_s12 }
  0x39   : > { %s5662_s7 = smov (%p40_p0, %s39_s7), 0  ;;  %s5664_s3 = smov (!%p40_p0, %s42_s3), %s4168_s18 }
  0x3a   : > { %5619 = sst [smem:[#allocation28_spill]] %s5662_s7  ;;  %s47_s10 = ssub.s32 %s4164_s17, %s5662_s7 }
  0x3b   : > { %p4400_p6 = por %p59_p7, %p58_p3  ;;  %p44_p8 = scmp.ge.s32.totalorder %s5664_s3, 2 }
  0x3c   : > { %p4406_p9 = por %p5581_p1, %p64_p5  ;;  %p4412_p10 = por %p268_p2, %p58_p3 }
  0x3d   : > { %p274_p0 = scmp.eq.s32.totalorder %s3274_s28, 3  ;;  %s5666_s3 = smov (%p44_p8, %s5664_s3), 0 }
  0x3e   : > { %5623 = sst [smem:[#allocation29_spill]] %s5666_s3  ;;  %s345_s29 = sand.u32 1, %s4152_s14  }
  0x3f   : > { %p4418_p7 = por %p274_p0, %p64_p5  ;;  %s46_s26 = ssub.s32 %s4168_s18, %s5666_s3 }
  0x40   : > { %s48_s30 = sor.u32 %s47_s10, %s46_s26  ;;  %p75_p1 = scmp.eq.s32.totalorder %s46_s26, 0 }
  0x41   : > { %s5624_s16 = scalar_select %p4418_p7, 1, 0 }
  0x42   : > { %p49_p12 = scmp.eq.s32.totalorder %s48_s30, 0  ;;  %s3280_s22 = sshll.u32 %s345_s29, 5 }
  0x43   : > { %5625 = sst [smem:[#allocation30_spill]] %s5624_s16  ;;  %s5626_s23 = sadd.s32 1, %s4140_s11 }
  0x44   : > { %s4428_s1 = scalar_select %p75_p1, %s4140_s11, %s5626_s23  }
  0x45   : > { %s4431_s28 = scalar_select %p49_p12, %s4152_s14, %s51_s15  }
  0x46   : > { %5627 = sst [smem:[#allocation31_spill]] %s4428_s1  ;;  %s3281_s4 = sshll.u32 %s4164_s17, 2 }
  0x47   : > { %5628 = sst [smem:[#allocation32_spill]] %s4431_s28  ;;  %s3282_s5 = sshll.u32 %s4168_s18, 3 }
  0x48   : > { %s349_s7 = scalar_lea.vmem [#allocation4], %s3280_s22  ;;  %s354_s12 = sadd.s32 %s3282_s5, %s3281_s4 }
  0x49   : > { %s359_s16 = sshll.u32 %s349_s7, 4  ;;  %s3283_s3 = sshll.u32 %s354_s12, 3  ;;  %s360_s16 = int_to_ptr.vmem [resolvable:$true] %s359_s16 }
  0x4a   : > { %p5629_p2 = scmp.lt.s32.totalorder %s4172_s19, 4  ;;  %s356_s23 = scalar_lea.hbm %s5565_s0, %s3283_s3 }
  0x4b   : > { %s3485_s30 = sshll.u32 %s4168_s18, 6  ;;  %s357_s15 = sshll.u32 %s356_s23, 4  ;;  %s358_s15 = int_to_ptr.hbm [resolvable:$true] %s357_s15 }
  0x4c   : > { %p3558_p3 = pnand %p5629_p2, %p4400_p6  ;;  %s400_s22 = scalar_lea.hbm %s5567_s2, %s3485_s30 }
  0x4d   : > { %s346_s14 = scalar_lea.sflag [#allocation5], %s345_s29  ;;  %s5630_s1 = smov 8  }
  0x4e   : > { %s5631_s7 = smov 128   ;;  %s401_s4 = sshll.u32 %s400_s22, 4  ;;  %s402_s4 = int_to_ptr.hbm [resolvable:$true] %s401_s4 }
  0x4f   : > { %3560 = dma.hbm_to_vmem [thread:$0]  (!%p3558_p3), %s358_s15, 512, %s360_s16, %s346_s14, %s5631_s7, %s5631_s7, %s5630_s1  }
  0x50   : > { %3566 = dma.hbm_to_vmem [thread:$0]  (!%p4355_p13), %s402_s4, 1024, %s404_s21, %s4364_s6, %s5631_s7, %s5631_s7, %s5630_s1  }
  0x51   : > { %415 = sbr.rel (%p4309_p4) target bundleno = 2163 (0x873), region = 56  ;;  %s4459_s5 = sand.u32 (!%p4309_p4), 1, %s4148_s13  }
  0x52   : > { %s3291_s12 = sshll.u32 (!%p4309_p4), %s4459_s5, 5  ;;  %s418_s17 = scalar_lea.sflag (!%p4309_p4), [#allocation5], %s4459_s5 }
  0x53   : > { %s4463_s14 = scalar_lea.vmem (!%p4309_p4), [#allocation4], %s3291_s12 }
  0x56   : > { %4111 = dma.done.wait (%p4406_p9), %s418_s17, 512  }
  0x57   : > { %4113 = vsyncadd (%p4406_p9), %s418_s17, 4294966784  ;;  %s5632_s1 = sld [smem:[#allocation21_spill]]  ;;  %s427_s24 = sand.u32 1, %s4300_s20  }
  0x58   : > { %s428_s3 = scalar_lea.sflag [#allocation8], %s427_s24 }
  0x5d   : > { %s429_s21 = sand.u32 1, %s5632_s1  }
  0x5e   : > { %s3292_s6 = sshll.u32 %s429_s21, 4 }
  0x5f   : > { %s431_s27 = scalar_lea.vmem [#allocation7], %s3292_s6 }
  0x60   : > { %4115 = dma.done.wait (%p4340_p11), %s428_s3, 1280  }
  0x61   : > { %4117 = vsyncadd (%p4340_p11), %s428_s3, 4294966016  ;;  %s3293_s16 = sshll.u32 %s429_s21, 6  ;;  %p5634_p1 = scmp.eq.s32.totalorder %s4300_s20, 0 }
  0x62   : > { %s441_s29 = scalar_lea.vmem [#allocation9], %s3293_s16 }
  0x63   : > { %4119 = dma.done.wait (%p5634_p1), [#allocation11], 3072   ;;  %p5635_p4 = pmov %p5634_p1 }
  0x64   : > { %p5636_p12 = pmov %p5634_p1 }
  0x65   : > { %4121 = vsyncadd (%p5635_p4), [#allocation11], 4294964224 }
  0x66   : > { %4123 = dma.done.wait (%p5636_p12), [#allocation14], 1024   ;;  %p5637_p13 = pmov %p5634_p1 }
  0x67   : > { %s4483_s9 = scalar_lea.vmem [#allocation15], %s3291_s12  ;;  %s5638_s28 = sld [smem:[#allocation24_spill]] }
  0x68   : > { %4125 = vsyncadd (%p5637_p13), [#allocation14], 4294966272 }
  0x6d   : > { %p3298_p5 = scmp.ne.s32.totalorder %s5638_s28, 0 }
  0x6e   : > { %s5639_s26 = sld [smem:[#allocation38_spill]] (!%p3298_p5)  ;;  %s4182_s22 = smov (!%p3298_p5), 96  }
  0x6f   : > { %508 = sbr.rel (%p3298_p5) target bundleno = 917 (0x395), region = 84  ;;  %s5640_s15 = sld [smem:[#allocation39_spill]] (!%p3298_p5) }
  0x70   : > { %s4183_s7 = smov (!%p3298_p5), 64   ;;  %s4184_s4 = smov (!%p3298_p5), 32  }
  0x74   : > { %v509_v0 = vld [vmem:[%s431_s27] sm:$0xff]  ;;  %vm519_vm0 = vcmask 523264   ;;  %v518_v2 = vld [vmem:[%s441_s29 + $0x38] sm:$0xff]  ;;  %v516_v6 = vld [vmem:[%s441_s29 + $0x28] sm:$0xff]  ;;  %v4181_v45 = vmov 128.0  }
  0x75   : > { %v517_v1 = vld [vmem:[%s441_s29 + $0x30] sm:$0xff]  ;;  %v520_v3 = vsel %vm519_vm0, %v509_v0, 0.0  ;;  %v515_v5 = vld [vmem:[%s441_s29 + $0x20] sm:$0xff]  ;;  %v510_v8 = vld [vmem:[%s431_s27 + $0x8] sm:$0xff] }
  0x76   : > { %v530_v4 = vpack.c.bf16 %v518_v2, %v517_v1  ;;  %521 = vadd.xlane.f32.xlu0 %v520_v3  ;;  %v529_v7 = vpack.c.bf16 %v516_v6, %v515_v5  ;;  %v513_v9 = vld [vmem:[%s441_s29 + $0x10] sm:$0xff]  ;;  %v514_v10 = vld [vmem:[%s441_s29 + $0x18] sm:$0xff]  ;;  %v523_v11 = vsel %vm519_vm0, %v510_v8, 0.0  ;;  %v511_v13 = vld [vmem:[%s441_s29] sm:$0xff]  ;;  %v526_v16 = vpack.c.bf16 %v510_v8, %v509_v0 }
  0x77   : > { %v528_v12 = vpack.c.bf16 %v514_v10, %v513_v9  ;;  %v512_v14 = vld [vmem:[%s441_s29 + $0x8] sm:$0xff]  ;;  %v3360_v60 = vld [vmem:[#allocation12 + $0x70] sm:$0xf]  ;;  %v3501_v61 = vld [vmem:[#allocation12 + $0x74] sm:$0xf0] }
  0x78   : > { %538 = vmatpush.bf16.msra.mxu0 %v530_v4  ;;  %v527_v15 = vpack.c.bf16 %v512_v14, %v511_v13  ;;  %v3500_v62 = vld [vmem:[#allocation12 + $0x74] sm:$0xf]  ;;  %v3361_v0 = vor.u32 %v3501_v61, %v3360_v60  ;;  %v3362_v1 = vld [vmem:[#allocation12 + $0x78] sm:$0xf0]  ;;  %v3352_v2 = vld [vmem:[#allocation12 + $0x60] sm:$0xf] }
  0x79   : > { %v3499_v3 = vld [vmem:[#allocation12 + $0x64] sm:$0xf0]  ;;  %v3365_v5 = vor.u32 %v3500_v62, %v3362_v1  ;;  %v3498_v6 = vld [vmem:[#allocation12 + $0x64] sm:$0xf]  ;;  %v3496_v13 = vld [vmem:[#allocation12 + $0x54] sm:$0xf] }
  0x7a   : > { %824 = vmatpush.bf16.msra.mxu1 %v3361_v0  ;;  %v3353_v8 = vor.u32 %v3499_v3, %v3352_v2  ;;  %v3346_v14 = vld [vmem:[#allocation12 + $0x58] sm:$0xf0]  ;;  %v3718_v60 = vld [vmem:[%s5640_s15] ss:$0 sm:$0xff]  ;;  %v3486_v62 = vld [vmem:[#allocation12 + $0x4] sm:$0xf] }
  0x7b   : > { %838 = vmatpush.bf16.msra.mxu2 %v3365_v5 }
  0x7c   : > { %539 = vmatpush.bf16.msra.mxu0 %v529_v7  ;;  %v3354_v7 = vld [vmem:[#allocation12 + $0x68] sm:$0xf0] }
  0x7d   : > { %v3357_v10 = vor.u32 %v3498_v6, %v3354_v7 }
  0x7e   : > { %524 = vadd.xlane.f32.xlu0 %v523_v11  ;;  %v3344_v11 = vld [vmem:[#allocation12 + $0x50] sm:$0xf]  ;;  %825 = vmatpush.bf16.msra.mxu1 %v3353_v8 }
  0x7f   : > { %839 = vmatpush.bf16.msra.mxu2 %v3357_v10 }
  0x80   : > { %540 = vmatpush.bf16.msra.mxu0 %v528_v12  ;;  %v3497_v12 = vld [vmem:[#allocation12 + $0x54] sm:$0xf0] }
  0x84   : > { %541 = vmatpush.bf16.msra.mxu0 %v527_v15  ;;  %v3345_v15 = vor.u32 %v3497_v12, %v3344_v11 }
  0x86   : > { %826 = vmatpush.bf16.msra.mxu1 %v3345_v15 }
  0x87   : > { %3299 = vmatmul.msk.bf16.vlgmr.msra.gmra.mxu0 %vm519_vm0, %v526_v16  ;;  %v3349_v16 = vor.u32 %v3496_v13, %v3346_v14 }
  0x89   : > { %840 = vmatpush.bf16.msra.mxu2 %v3349_v16 }
  0xe9   : > { %v522_v17 = vpop.xlane.xlu0 %521 }
  0xea   : > { %v548_v18 = vadd.f32 1e-06, %v522_v17  ;;  %v3336_v17 = vld [vmem:[#allocation12 + $0x40] sm:$0xf] }
  0xec   : > { %3719 = vrcp.f32 %v548_v18  ;;  %vm555_vm1 = vweird.f32 %v548_v18  ;;  %v561_v28 = vand.u32 2147483648, %v548_v18  ;;  %v559_v30 = vand.u32 2147483647, %v548_v18 }
  0xee   : > { %v562_v33 = vor.u32 1.1754944e-38, %v561_v28  ;;  %vm560_vm4 = vcmp.eq.f32.partialorder %v559_v30, 8.507059e+37  ;;  %v3493_v28 = vld [vmem:[#allocation12 + $0x34] sm:$0xf0]  ;;  %v3492_v30 = vld [vmem:[#allocation12 + $0x34] sm:$0xf] }
  0xf1   : > { %v525_v19 = vpop.xlane.xlu0 %524 }
  0xf2   : > { %v3720_v20 = vpop.eup %3719  ;;  %v549_v21 = vadd.f32 1e-06, %v525_v19 }
  0xf3   : > { %v551_v22 = vmul.f32 %v3720_v20, %v548_v18  ;;  %vm556_vm2 = vweird.f32 %v3720_v20  ;;  %v3495_v18 = vld [vmem:[#allocation12 + $0x44] sm:$0xf0] }
  0xf4   : > { %3721 = vrcp.f32 %v549_v21  ;;  %vm557_vm3 = vmor %vm555_vm1, %vm556_vm2  ;;  %vm569_vm5 = vweird.f32 %v549_v21  ;;  %v575_v38 = vand.u32 2147483648, %v549_v21  ;;  %v573_v39 = vand.u32 2147483647, %v549_v21 }
  0xf5   : > { %v552_v23 = vsub.f32 1.0, %v551_v22  ;;  %3723 = vrcp.f32 %v4181_v45  ;;  %v3489_v45 = vld [vmem:[#allocation12 + $0x14] sm:$0xf0] }
  0xf6   : > { %v576_v41 = vor.u32 1.1754944e-38, %v575_v38  ;;  %vm574_vm8 = vcmp.eq.f32.partialorder %v573_v39, 8.507059e+37  ;;  %v3490_v38 = vld [vmem:[#allocation12 + $0x24] sm:$0xf]  ;;  %v3322_v39 = vld [vmem:[#allocation12 + $0x28] sm:$0xf0] }
  0xf7   : > { %v553_v24 = vmul.f32 %v3720_v20, %v552_v23  ;;  %v3337_v23 = vor.u32 %v3495_v18, %v3336_v17 }
  0xf9   : > { %v554_v27 = vadd.f32 %v3720_v20, %v553_v24  ;;  %827 = vmatpush.bf16.msra.mxu1 %v3337_v23 }
  0xfa   : > { %v3722_v25 = vpop.eup %3721 }
  0xfb   : > { %v565_v26 = vmul.f32 %v3722_v25, %v549_v21  ;;  %v558_v31 = vsel %vm557_vm3, %v3720_v20, %v554_v27  ;;  %vm570_vm6 = vweird.f32 %v3722_v25  ;;  %v3724_v46 = vpop.eup %3723  ;;  %v3494_v20 = vld [vmem:[#allocation12 + $0x44] sm:$0xf]  ;;  %v3338_v21 = vld [vmem:[#allocation12 + $0x48] sm:$0xf0]  ;;  %v3328_v27 = vld [vmem:[#allocation12 + $0x30] sm:$0xf] }
  0xfc   : > { %v563_v35 = vsel %vm560_vm4, %v562_v33, %v558_v31  ;;  %vm571_vm7 = vmor %vm569_vm5, %vm570_vm6  ;;  %v585_v47 = vmul.f32 128.0, %v3724_v46  ;;  %vm589_vm9 = vweird.f32 %v3724_v46  ;;  %v3330_v31 = vld [vmem:[#allocation12 + $0x38] sm:$0xf0]  ;;  %v3329_v33 = vor.u32 %v3493_v28, %v3328_v27 }
  0xfd   : > { %v566_v29 = vsub.f32 1.0, %v565_v26  ;;  %v3341_v26 = vor.u32 %v3494_v20, %v3338_v21 }
  0xfe   : > { %v586_v48 = vsub.f32 1.0, %v585_v47  ;;  %828 = vmatpush.bf16.msra.mxu1 %v3329_v33 }
  0xff   : > { %v567_v32 = vmul.f32 %v3722_v25, %v566_v29  ;;  %841 = vmatpush.bf16.msra.mxu2 %v3341_v26 }
 0x100   : > { %v587_v49 = vmul.f32 %v3724_v46, %v586_v48  ;;  %v3488_v48 = vld [vmem:[#allocation12 + $0x14] sm:$0xf] }
 0x101   : > { %v568_v37 = vadd.f32 %v3722_v25, %v567_v32 }
 0x102   : > { %v588_v50 = vadd.f32 %v3724_v46, %v587_v49  ;;  %v3314_v49 = vld [vmem:[#allocation12 + $0x18] sm:$0xf0] }
 0x103   : > { %v572_v40 = vsel %vm571_vm7, %v3722_v25, %v568_v37 }
 0x104   : > { %v543_v34 = vpop.f32.mrf.mxu0  ;;  %v577_v43 = vsel %vm574_vm8, %v576_v41, %v572_v40  ;;  %v590_v51 = vsel %vm589_vm9, %v3724_v46, %v588_v50  ;;  %v3717_v50 = vld [vmem:[%s5639_s26] ss:$0 sm:$0xff]  ;;  %vm873_vm8 = vcmask 1047556   ;;  %vm1101_vm9 = vcmask 257024  }
 0x105   : > { %v578_v36 = vmul.f32 %v563_v35, %v543_v34  ;;  %v3333_v34 = vor.u32 %v3492_v30, %v3330_v31  ;;  %v3320_v35 = vld [vmem:[#allocation12 + $0x20] sm:$0xf] }
 0x107   : > { %580 = vadd.xlane.f32.xlu1 %v578_v36  ;;  %842 = vmatpush.bf16.msra.mxu2 %v3333_v34 }
 0x10c   : > { %v545_v42 = vpop.f32.mrf.mxu0 }
 0x10d   : > { %v579_v44 = vmul.f32 %v577_v43, %v545_v42  ;;  %v3325_v43 = vor.u32 %v3490_v38, %v3322_v39 }
 0x10f   : > { %582 = vadd.xlane.f32.xlu1 %v579_v44  ;;  %843 = vmatpush.bf16.msra.mxu2 %v3325_v43 }
 0x17a   : > { %v581_v52 = vpop.xlane.xlu1 %580 }
 0x17b   : > { %v591_v53 = vmul.f32 %v590_v51, %v581_v52 }
 0x17d   : > { %v4489_v54 = vsub.f32 %v578_v36, %v591_v53  ;;  %v3491_v36 = vld [vmem:[#allocation12 + $0x24] sm:$0xf0] }
 0x17e   : > { %v3321_v41 = vor.u32 %v3491_v36, %v3320_v35 }
 0x17f   : > { %v595_v55 = vmul.f32 %v4489_v54, %v4489_v54 }
 0x180   : > { %829 = vmatpush.bf16.msra.mxu1 %v3321_v41 }
 0x181   : > { %597 = vadd.xlane.f32.xlu2 %v595_v55 }
 0x182   : > { %v583_v56 = vpop.xlane.xlu1 %582 }
 0x183   : > { %v592_v57 = vmul.f32 %v590_v51, %v583_v56  ;;  %v3317_v56 = vor.u32 %v3488_v48, %v3314_v49 }
 0x185   : > { %v4493_v58 = vsub.f32 %v579_v44, %v592_v57  ;;  %v3312_v44 = vld [vmem:[#allocation12 + $0x10] sm:$0xf]  ;;  %v3304_v57 = vld [vmem:[#allocation12] sm:$0xf]  ;;  %844 = vmatpush.bf16.msra.mxu2 %v3317_v56 }
 0x186   : > { %v3313_v53 = vor.u32 %v3489_v45, %v3312_v44 }
 0x187   : > { %v596_v59 = vmul.f32 %v4493_v58, %v4493_v58 }
 0x188   : > { %830 = vmatpush.bf16.msra.mxu1 %v3313_v53 }
 0x189   : > { %599 = vadd.xlane.f32.xlu2 %v596_v59  ;;  %v3487_v59 = vld [vmem:[#allocation12 + $0x4] sm:$0xf0] }
 0x18a   : > { %v3305_v2 = vor.u32 %v3487_v59, %v3304_v57 }
 0x18c   : > { %831 = vmatpush.bf16.msra.mxu1 %v3305_v2 }
 0x1f4   : > { %v598_v63 = vpop.xlane.xlu2 %597 }
 0x1f5   : > { %v601_v4 = vmul.f32 %v598_v63, %v590_v51  ;;  %v3306_v63 = vld [vmem:[#allocation12 + $0x8] sm:$0xf0] }
 0x1f6   : > { %v3309_v3 = vor.u32 %v3486_v62, %v3306_v63 }
 0x1f7   : > { %v603_v9 = vadd.f32 1e-05, %v601_v4 }
 0x1f8   : > { %845 = vmatpush.bf16.msra.mxu2 %v3309_v3 }
 0x1f9   : > { %3725 = vrsqrt.f32 %v603_v9  ;;  %vm611_vm11 = vweird.f32 %v603_v9 }
 0x1fc   : > { %v600_v19 = vpop.xlane.xlu2 %599 }
 0x1fd   : > { %v602_v22 = vmul.f32 %v600_v19, %v590_v51 }
 0x1ff   : > { %v3726_v24 = vpop.eup %3725  ;;  %v604_v25 = vadd.f32 1e-05, %v602_v22 }
 0x200   : > { %v606_v29 = vmul.f32 %v3726_v24, %v603_v9  ;;  %vm612_vm10 = vweird.f32 %v3726_v24 }
 0x201   : > { %3727 = vrsqrt.f32 %v604_v25  ;;  %vm613_vm12 = vmor %vm611_vm11, %vm612_vm10  ;;  %vm621_vm14 = vweird.f32 %v604_v25 }
 0x202   : > { %v607_v32 = vmul.f32 %v3726_v24, %v606_v29 }
 0x204   : > { %v608_v37 = vmul.f32 0.5, %v607_v32 }
 0x206   : > { %v609_v40 = vsub.f32 1.5, %v608_v37 }
 0x207   : > { %v3728_v42 = vpop.eup %3727 }
 0x208   : > { %v610_v46 = vmul.f32 %v3726_v24, %v609_v40  ;;  %v616_v47 = vmul.f32 %v3728_v42, %v604_v25  ;;  %vm622_vm13 = vweird.f32 %v3728_v42 }
 0x209   : > { %vm623_vm15 = vmor %vm621_vm14, %vm622_vm13 }
 0x20a   : > { %v614_v51 = vsel %vm613_vm12, %v3726_v24, %v610_v46  ;;  %v617_v52 = vmul.f32 %v3728_v42, %v616_v47 }
 0x20b   : > { %v625_v55 = vmul.f32 %v614_v51, %v4489_v54 }
 0x20c   : > { %v618_v61 = vmul.f32 0.5, %v617_v52 }
 0x20d   : > { %v631_v0 = vmul.f32 %v3717_v50, %v625_v55 }
 0x20e   : > { %v619_v1 = vsub.f32 1.5, %v618_v61 }
 0x20f   : > { %v4504_v4 = vadd.f32 %v3718_v60, %v631_v0 }
 0x210   : > { %v620_v54 = vmul.f32 %v3728_v42, %v619_v1 }
 0x211   : > { %v4507_v5 = vmul.f32 0.70710677, %v4504_v4 }
 0x212   : > { %v624_v6 = vsel %vm623_vm15, %v3728_v42, %v620_v54 }
 0x213   : > { %v626_v7 = vmul.f32 %v624_v6, %v4493_v58  ;;  %v643_v8 = vmul.f32 %v4507_v5, %v4507_v5 }
 0x215   : > { %v632_v9 = vmul.f32 %v3717_v50, %v626_v7  ;;  %v644_v10 = vmin.f32 %v643_v8, 16.0 }
 0x217   : > { %v4512_v11 = vadd.f32 %v3718_v60, %v632_v9  ;;  %v645_v12 = vmul.f32 2.1237322e-06, %v644_v10  ;;  %v656_v13 = vmul.f32 3.8918573e-05, %v644_v10 }
 0x219   : > { %v4515_v14 = vmul.f32 0.70710677, %v4512_v11  ;;  %v646_v15 = vadd.f32 0.00028619796, %v645_v12  ;;  %v657_v16 = vadd.f32 0.001143296, %v656_v13 }
 0x21b   : > { %v683_v17 = vmul.f32 %v4515_v14, %v4515_v14  ;;  %v647_v18 = vmul.f32 %v646_v15, %v644_v10  ;;  %v658_v58 = vmul.f32 %v657_v16, %v644_v10 }
 0x21d   : > { %v684_v19 = vmin.f32 %v683_v17, 16.0  ;;  %v659_v20 = vadd.f32 0.014752088, %v658_v58  ;;  %v648_v23 = vadd.f32 0.0036580483, %v647_v18 }
 0x21f   : > { %v685_v21 = vmul.f32 2.1237322e-06, %v684_v19  ;;  %v696_v22 = vmul.f32 3.8918573e-05, %v684_v19  ;;  %v660_v24 = vmul.f32 %v659_v20, %v644_v10  ;;  %v649_v30 = vmul.f32 %v648_v23, %v644_v10 }
 0x220   : > { %v639_v20 = vmul.f32 0.5, %v4504_v4 }
 0x221   : > { %v686_v25 = vadd.f32 0.00028619796, %v685_v21  ;;  %v697_v26 = vadd.f32 0.001143296, %v696_v22  ;;  %v661_v27 = vadd.f32 0.112945676, %v660_v24 }
 0x222   : > { %v650_v36 = vadd.f32 0.05243302, %v649_v30  ;;  %v640_v21 = vmul.f32 0.5, %v4512_v11  ;;  %v4185_v30 = vmov 1983009808  }
 0x223   : > { %v687_v28 = vmul.f32 %v686_v25, %v684_v19  ;;  %v698_v29 = vmul.f32 %v697_v26, %v684_v19  ;;  %v662_v31 = vmul.f32 %v661_v27, %v644_v10 }
 0x224   : > { %v651_v42 = vmul.f32 %v650_v36, %v644_v10 }
 0x225   : > { %v688_v32 = vadd.f32 0.0036580483, %v687_v28  ;;  %v699_v33 = vadd.f32 0.014752088, %v698_v29  ;;  %v663_v34 = vadd.f32 0.4994258, %v662_v31  ;;  %v878_v31 = vunpack.c.l.s4 %v4185_v30 }
 0x226   : > { %v652_v46 = vadd.f32 0.18741608, %v651_v42 }
 0x227   : > { %v700_v35 = vmul.f32 %v699_v33, %v684_v19  ;;  %v664_v37 = vmul.f32 %v663_v34, %v644_v10  ;;  %v689_v38 = vmul.f32 %v688_v32, %v684_v19 }
 0x228   : > { %v653_v51 = vmul.f32 %v652_v46, %v644_v10 }
 0x229   : > { %v701_v39 = vadd.f32 0.112945676, %v700_v35  ;;  %v665_v40 = vadd.f32 1.0, %v664_v37  ;;  %v690_v43 = vadd.f32 0.05243302, %v689_v38 }
 0x22a   : > { %v654_v59 = vadd.f32 1.1283791, %v653_v51 }
 0x22b   : > { %v702_v41 = vmul.f32 %v701_v39, %v684_v19  ;;  %3729 = vrcp.f32 %v665_v40  ;;  %v691_v47 = vmul.f32 %v690_v43, %v684_v19  ;;  %v677_v55 = vand.u32 2147483648, %v665_v40 }
 0x22c   : > { %v675_v57 = vand.u32 2147483647, %v665_v40  ;;  %vm671_vm1 = vweird.f32 %v665_v40  ;;  %v655_v2 = vmul.f32 %v654_v59, %v4507_v5 }
 0x22d   : > { %v703_v44 = vadd.f32 0.4994258, %v702_v41  ;;  %v692_v53 = vadd.f32 0.18741608, %v691_v47  ;;  %v678_v63 = vor.u32 1.1754944e-38, %v677_v55 }
 0x22e   : > { %vm676_vm3 = vcmp.eq.f32.partialorder %v675_v57, 8.507059e+37  ;;  %v4186_v47 = vmov 1934713408  }
 0x22f   : > { %v704_v45 = vmul.f32 %v703_v44, %v684_v19  ;;  %v693_v62 = vmul.f32 %v692_v53, %v684_v19 }
 0x231   : > { %v705_v48 = vadd.f32 1.0, %v704_v45  ;;  %v3730_v49 = vpop.eup %3729  ;;  %v694_v6 = vadd.f32 1.1283791, %v693_v62 }
 0x232   : > { %v667_v50 = vmul.f32 %v3730_v49, %v665_v40  ;;  %vm672_vm0 = vweird.f32 %v3730_v49  ;;  %v4532_v40 = vunpack.c.0.s8 %v878_v31 }
 0x233   : > { %3731 = vrcp.f32 %v705_v48  ;;  %vm673_vm2 = vmor %vm671_vm1, %vm672_vm0  ;;  %v717_v7 = vand.u32 2147483648, %v705_v48  ;;  %v715_v10 = vand.u32 2147483647, %v705_v48  ;;  %vm711_vm5 = vweird.f32 %v705_v48 }
 0x234   : > { %v668_v52 = vsub.f32 1.0, %v667_v50  ;;  %v695_v16 = vmul.f32 %v694_v6, %v4515_v14 }
 0x235   : > { %v718_v13 = vor.u32 1.1754944e-38, %v717_v7  ;;  %vm716_vm7 = vcmp.eq.f32.partialorder %v715_v10, 8.507059e+37 }
 0x236   : > { %v669_v56 = vmul.f32 %v3730_v49, %v668_v52 }
 0x238   : > { %v670_v61 = vadd.f32 %v3730_v49, %v669_v56 }
 0x239   : > { %v3732_v60 = vpop.eup %3731 }
 0x23a   : > { %v707_v0 = vmul.f32 %v3732_v60, %v705_v48  ;;  %v674_v1 = vsel %vm673_vm2, %v3730_v49, %v670_v61  ;;  %vm712_vm4 = vweird.f32 %v3732_v60  ;;  %v902_v48 = vunpack.c.l.s4 %v4186_v47 }
 0x23b   : > { %v679_v3 = vsel %vm676_vm3, %v678_v63, %v674_v1  ;;  %vm713_vm6 = vmor %vm711_vm5, %vm712_vm4 }
 0x23c   : > { %v708_v54 = vsub.f32 1.0, %v707_v0  ;;  %v680_v8 = vmul.f32 %v679_v3, %v655_v2  ;;  %v4553_v2 = vunpack.c.0.s8 %v902_v48 }
 0x23e   : > { %v709_v9 = vmul.f32 %v3732_v60, %v708_v54  ;;  %v3300_v15 = vclamps-f32 %v680_v8, 1.0 }
 0x240   : > { %v710_v12 = vadd.f32 %v3732_v60, %v709_v9  ;;  %v723_v19 = vadd.f32 1.0, %v3300_v15 }
 0x242   : > { %v714_v17 = vsel %vm713_vm6, %v3732_v60, %v710_v12  ;;  %v725_v23 = vmul.f32 %v723_v19, %v639_v20 }
 0x243   : > { %v719_v18 = vsel %vm716_vm7, %v718_v13, %v714_v17 }
 0x244   : > { %v720_v58 = vmul.f32 %v719_v18, %v695_v16 }
 0x246   : > { %v3301_v5 = vclamps-f32 %v720_v58, 1.0 }
 0x248   : > { %v724_v22 = vadd.f32 1.0, %v3301_v5 }
 0x24a   : > { %v726_v24 = vmul.f32 %v724_v22, %v640_v21 }
 0x24c   : > { %v727_v25 = vpack.c.bf16 %v726_v24, %v725_v23 }
 0x24e   : > { %832 = vmatmul.bf16.vlgmr.msra.gmra.mxu1 %v727_v25  ;;  %846 = vmatmul.bf16.vlgmr.msra.gmra.mxu2 %v727_v25 }
 0x2cb   : > { %v833_v26 = vpop.f32.mrf.mxu1 }
 0x2cc   : > { %v875_v33 = vrot.slane %v833_v26, 4 }
 0x2d1   : > { %v4523_v27 = vpop.f32.mrf.mxu2 }
 0x2d2   : > { %v1132_v49 = vrot.slane %v4523_v27, 4 }
 0x2d3   : > { %v835_v14 = vpop.f32.mrf.mxu1 }
 0x2d4   : > { %v3692_v28 = vpack.i.bf16 %v835_v14, %v833_v26  ;;  %v931_v37 = vrot.slane %v835_v14, 4 }
 0x2d6   : > { %3693 = vrot.lane.b32.xlu2 %v3692_v28, %s4182_s22  ;;  %3688 = vrot.lane.b32.xlu0 %v3692_v28, %s4183_s7 }
 0x2d9   : > { %v849_v29 = vpop.f32.mrf.mxu2 }
 0x2da   : > { %v3697_v4 = vpack.i.bf16 %v849_v29, %v4523_v27  ;;  %v1188_v52 = vrot.slane %v849_v29, 4 }
 0x2dc   : > { %3698 = vrot.lane.b32.xlu1 %v3697_v4, %s4183_s7 }
 0x2de   : > { %3708 = vrot.lane.b32.xlu2 %v3697_v4, %s4182_s22  ;;  %3703 = vrot.lane.b32.xlu0 %v3692_v28, %s4184_s4 }
 0x2e4   : > { %3713 = vrot.lane.b32.xlu1 %v3697_v4, %s4184_s4 }
 0x330   : > { %v4526_v11 = vpop.permute.xlu2 %3693 }
 0x331   : > { %v3696_v38 = vunpack.i.h.bf16 %v4526_v11  ;;  %v3695_v39 = vunpack.i.l.bf16 %v4526_v11 }
 0x333   : > { %v943_v53 = vrot.slane %v3696_v38, 4  ;;  %v887_v55 = vrot.slane %v3695_v39, 4 }
 0x338   : > { %v4528_v34 = vpop.permute.xlu2 %3708 }
 0x339   : > { %v3711_v44 = vunpack.i.h.bf16 %v4528_v34  ;;  %v3710_v45 = vunpack.i.l.bf16 %v4528_v34 }
 0x33b   : > { %v4546_v63 = vrot.slane %v3711_v44, 4  ;;  %v4550_v0 = vrot.slane %v3710_v45, 4 }
 0x348   : > { %v3689_v32 = vpop.permute.xlu0 %3688 }
 0x349   : > { %v3691_v35 = vunpack.i.h.bf16 %v3689_v32  ;;  %v3690_v36 = vunpack.i.l.bf16 %v3689_v32 }
 0x34b   : > { %v929_v41 = vrot.slane %v3691_v35, 4  ;;  %v872_v42 = vrot.slane %v3690_v36, 4  ;;  %v876_v43 = vsel %vm873_vm8, %v3690_v36, %v875_v33  ;;  %v932_v46 = vsel %vm873_vm8, %v3691_v35, %v931_v37 }
 0x34c   : > { %v884_v56 = vperm.slane %v876_v43, %v4532_v40  ;;  %v940_v60 = vperm.slane %v932_v46, %v4532_v40 }
 0x34d   : > { %v930_v50 = vsel %vm873_vm8, %v929_v41, %v835_v14  ;;  %v874_v51 = vsel %vm873_vm8, %v872_v42, %v833_v26 }
 0x34e   : > { %v3699_v57 = vpop.permute.xlu1 %3698  ;;  %v936_v59 = vperm.slane %v930_v50, %v4532_v40  ;;  %v880_v1 = vperm.slane %v874_v51, %v4532_v40  ;;  %v911_v9 = vrot.slane %v884_v56, 4  ;;  %v967_v16 = vrot.slane %v940_v60, 4 }
 0x34f   : > { %v3701_v61 = vunpack.i.h.bf16 %v3699_v57  ;;  %v3700_v62 = vunpack.i.l.bf16 %v3699_v57 }
 0x350   : > { %v3704_v3 = vpop.permute.xlu0 %3703  ;;  %v955_v15 = vrot.slane %v936_v59, 4  ;;  %v899_v58 = vrot.slane %v880_v1, 4 }
 0x351   : > { %v1186_v54 = vrot.slane %v3701_v61, 4  ;;  %v1130_v6 = vrot.slane %v3700_v62, 4  ;;  %v1133_v7 = vsel %vm873_vm8, %v3700_v62, %v1132_v49  ;;  %v1189_v8 = vsel %vm873_vm8, %v3701_v61, %v1188_v52 }
 0x352   : > { %v4558_v10 = vperm.slane %v1133_v7, %v4532_v40  ;;  %v3706_v12 = vunpack.i.h.bf16 %v3704_v3  ;;  %v3705_v13 = vunpack.i.l.bf16 %v3704_v3  ;;  %v4570_v20 = vperm.slane %v1189_v8, %v4532_v40 }
 0x353   : > { %v1187_v17 = vsel %vm873_vm8, %v1186_v54, %v849_v29  ;;  %v1131_v18 = vsel %vm873_vm8, %v1130_v6, %v4523_v27 }
 0x354   : > { %v4564_v5 = vperm.slane %v1187_v17, %v4532_v40  ;;  %v4567_v19 = vperm.slane %v1131_v18, %v4532_v40  ;;  %v941_v21 = vrot.slane %v3706_v12, 4  ;;  %v944_v22 = vsel %vm873_vm8, %v3706_v12, %v943_v53 }
 0x355   : > { %v885_v23 = vrot.slane %v3705_v13, 4  ;;  %v888_v24 = vsel %vm873_vm8, %v3705_v13, %v887_v55  ;;  %v1168_v26 = vrot.slane %v4558_v10, 4  ;;  %v952_v27 = vperm.slane %v944_v22, %v4532_v40 }
 0x356   : > { %v1156_v25 = vrot.slane %v4567_v19, 4  ;;  %v896_v14 = vperm.slane %v888_v24, %v4532_v40  ;;  %v4578_v28 = vpop.permute.xlu1 %3713  ;;  %v942_v29 = vsel %vm873_vm8, %v941_v21, %v3696_v38  ;;  %v1224_v34 = vrot.slane %v4570_v20, 4 }
 0x357   : > { %v886_v4 = vsel %vm873_vm8, %v885_v23, %v3695_v39  ;;  %v3716_v11 = vunpack.i.h.bf16 %v4578_v28  ;;  %v3715_v30 = vunpack.i.l.bf16 %v4578_v28  ;;  %v948_v31 = vperm.slane %v942_v29, %v4532_v40 }
 0x358   : > { %v965_v32 = vrot.slane %v952_v27, 4  ;;  %v892_v33 = vperm.slane %v886_v4, %v4532_v40  ;;  %v909_v35 = vrot.slane %v896_v14, 4  ;;  %v912_v36 = vsel %vm873_vm8, %v896_v14, %v911_v9 }
 0x359   : > { %v968_v37 = vsel %vm873_vm8, %v952_v27, %v967_v16  ;;  %v4590_v41 = vrot.slane %v3716_v11, 4  ;;  %v4594_v38 = vrot.slane %v3715_v30, 4  ;;  %v953_v39 = vrot.slane %v948_v31, 4 }
 0x35a   : > { %v897_v42 = vrot.slane %v892_v33, 4  ;;  %v900_v43 = vsel %vm873_vm8, %v892_v33, %v899_v58  ;;  %v910_v46 = vsel %vm873_vm8, %v909_v35, %v884_v56  ;;  %v920_v49 = vperm.slane %v912_v36, %v4553_v2 }
 0x35b   : > { %v908_v47 = vperm.slane %v900_v43, %v4553_v2  ;;  %v916_v48 = vperm.slane %v910_v46, %v4553_v2  ;;  %v956_v50 = vsel %vm873_vm8, %v948_v31, %v955_v15  ;;  %v954_v52 = vsel %vm873_vm8, %v953_v39, %v936_v59 }
 0x35c   : > { %v898_v51 = vsel %vm873_vm8, %v897_v42, %v880_v1  ;;  %v964_v53 = vperm.slane %v956_v50, %v4553_v2  ;;  %v966_v55 = vsel %vm873_vm8, %v965_v32, %v940_v60  ;;  %v927_v62 = vrot.slane %v920_v49, 4 }
 0x35d   : > { %v904_v57 = vperm.slane %v898_v51, %v4553_v2  ;;  %v923_v61 = vrot.slane %v908_v47, 4  ;;  %v925_v56 = vrot.slane %v916_v48, 4  ;;  %v960_v3 = vperm.slane %v954_v52, %v4553_v2 }
 0x35e   : > { %v972_v54 = vperm.slane %v966_v55, %v4553_v2  ;;  %v976_v6 = vperm.slane %v968_v37, %v4553_v2  ;;  %v979_v7 = vrot.slane %v964_v53, 4  ;;  %v928_v9 = vsel %vm873_vm8, 0.0, %v927_v62 }
 0x35f   : > { %v921_v8 = vrot.slane %v904_v57, 4  ;;  %v924_v1 = vsel %vm873_vm8, 0.0, %v923_v61  ;;  %v926_v59 = vsel %vm873_vm8, 0.0, %v925_v56  ;;  %v977_v60 = vrot.slane %v960_v3, 4 }
 0x360   : > { %v980_v12 = vsel %vm873_vm8, 0.0, %v979_v7  ;;  %v981_v13 = vrot.slane %v972_v54, 4  ;;  %v983_v15 = vrot.slane %v976_v6, 4  ;;  %v985_v17 = vsel %vm873_vm8, %v923_v61, %v904_v57 }
 0x361   : > { %v922_v16 = vsel %vm873_vm8, 0.0, %v921_v8  ;;  %v990_v18 = vrot.slane %v924_v1, 4  ;;  %v996_v58 = vsel %vm873_vm8, %v927_v62, %v916_v48  ;;  %v978_v21 = vsel %vm873_vm8, 0.0, %v977_v60 }
 0x362   : > { %v982_v22 = vsel %vm873_vm8, 0.0, %v981_v13  ;;  %v984_v23 = vsel %vm873_vm8, 0.0, %v983_v15  ;;  %v989_v24 = vperm.slane %v985_v17, %v4532_v40  ;;  %v1000_v14 = vperm.slane %v996_v58, %v4532_v40 }
 0x363   : > { %v991_v27 = vsel %vm873_vm8, %v990_v18, %v922_v16  ;;  %v1001_v29 = vrot.slane %v928_v9, 4  ;;  %v1039_v4 = vsel %vm873_vm8, %v979_v7, %v960_v3  ;;  %v1044_v35 = vrot.slane %v980_v12, 4 }
 0x364   : > { %v995_v31 = vperm.slane %v991_v27, %v4532_v40  ;;  %v1009_v32 = vrot.slane %v989_v24, 4  ;;  %v1043_v33 = vperm.slane %v1039_v4, %v4532_v40  ;;  %v1021_v37 = vrot.slane %v1000_v14, 4 }
 0x365   : > { %v1002_v36 = vsel %vm873_vm8, %v1001_v29, %v926_v59  ;;  %v1050_v39 = vsel %vm873_vm8, %v983_v15, %v972_v54  ;;  %v1055_v42 = vrot.slane %v984_v23, 4  ;;  %v1045_v48 = vsel %vm873_vm8, %v1044_v35, %v978_v21 }
 0x366   : > { %v1006_v43 = vperm.slane %v1002_v36, %v4532_v40  ;;  %v1007_v46 = vrot.slane %v995_v31, 4  ;;  %v1010_v47 = vsel %vm873_vm8, %v995_v31, %v1009_v32  ;;  %v1049_v50 = vperm.slane %v1045_v48, %v4532_v40 }
 0x367   : > { %v1018_v49 = vperm.slane %v1010_v47, %v4553_v2  ;;  %v1054_v51 = vperm.slane %v1050_v39, %v4532_v40  ;;  %v1056_v52 = vsel %vm873_vm8, %v1055_v42, %v982_v22  ;;  %v1063_v7 = vrot.slane %v1043_v33, 4 }
 0x368   : > { %v1008_v53 = vsel %vm873_vm8, %v1007_v46, %v989_v24  ;;  %v1019_v55 = vrot.slane %v1006_v43, 4  ;;  %v1022_v57 = vsel %vm873_vm8, %v1006_v43, %v1021_v37  ;;  %v1060_v61 = vperm.slane %v1056_v52, %v4532_v40 }
 0x369   : > { %v1014_v56 = vperm.slane %v1008_v53, %v4553_v2  ;;  %v1030_v62 = vperm.slane %v1022_v57, %v4553_v2  ;;  %v1037_v3 = vrot.slane %v1018_v49, 4  ;;  %v1061_v54 = vrot.slane %v1049_v50, 4 }
 0x36a   : > { %v1020_v6 = vsel %vm873_vm8, %v1019_v55, %v1000_v14  ;;  %v1073_v8 = vrot.slane %v1060_v61, 4  ;;  %v1075_v1 = vrot.slane %v1054_v51, 4  ;;  %v1064_v15 = vsel %vm873_vm8, %v1049_v50, %v1063_v7 }
 0x36b   : > { %v1026_v59 = vperm.slane %v1020_v6, %v4553_v2  ;;  %v1033_v9 = vrot.slane %v1014_v56, 4  ;;  %v1035_v60 = vrot.slane %v1030_v62, 4  ;;  %v1038_v12 = vsel %vm873_vm8, %v1030_v62, %v1037_v3 }
 0x36c   : > { %v1062_v13 = vsel %vm873_vm8, %v1061_v54, %v1043_v33  ;;  %v1074_v16 = vsel %vm873_vm8, %v1073_v8, %v1054_v51  ;;  %v1076_v17 = vsel %vm873_vm8, %v1060_v61, %v1075_v1  ;;  %v1072_v23 = vperm.slane %v1064_v15, %v4553_v2 }
 0x36d   : > { %v1031_v18 = vrot.slane %v1026_v59, 4  ;;  %v1034_v58 = vsel %vm873_vm8, %v1026_v59, %v1033_v9  ;;  %v1036_v21 = vsel %vm873_vm8, %v1035_v60, %v1018_v49  ;;  %v1068_v22 = vperm.slane %v1062_v13, %v4553_v2 }
 0x36e   : > { %v1080_v24 = vperm.slane %v1074_v16, %v4553_v2  ;;  %v1084_v27 = vperm.slane %v1076_v17, %v4553_v2  ;;  %v1095_v14 = vpack.c.bf16 %v1034_v58, %v1034_v58  ;;  %v1097_v31 = vpack.c.bf16 %v1036_v21, %v1036_v21 }
 0x36f   : > { %v1032_v29 = vsel %vm873_vm8, %v1031_v18, %v1014_v56  ;;  %v1087_v4 = vrot.slane %v1068_v22, 4  ;;  %v1099_v32 = vpack.c.bf16 %v1038_v12, %v1038_v12  ;;  %v1091_v36 = vrot.slane %v1072_v23, 4 }
 0x370   : > { %v1085_v33 = vrot.slane %v1080_v24, 4  ;;  %v1089_v35 = vrot.slane %v1084_v27, 4  ;;  %v1093_v37 = vpack.c.bf16 %v1032_v29, %v1032_v29  ;;  %1104 = vst.msk [vmem:[#allocation2 + $0x8] sm:$0xf] %vm1101_vm9, %v1095_v14  ;;  %v1143_v42 = vsel %vm873_vm8, %v4594_v38, %v3710_v45 }
 0x371   : > { %v1088_v39 = vsel %vm873_vm8, %v1080_v24, %v1087_v4  ;;  %1106 = vst.msk [vmem:[#allocation2 + $0x10] sm:$0xf] %vm1101_vm9, %v1097_v31  ;;  %v1145_v43 = vsel %vm873_vm8, %v3715_v30, %v4550_v0  ;;  %v1199_v46 = vsel %vm873_vm8, %v4590_v41, %v3711_v44  ;;  %v1092_v49 = vsel %vm873_vm8, %v1084_v27, %v1091_v36 }
 0x372   : > { %v1086_v47 = vsel %vm873_vm8, %v1085_v33, %v1068_v22  ;;  %v1090_v48 = vsel %vm873_vm8, %v1089_v35, %v1072_v23  ;;  %v1096_v50 = vpack.c.bf16 %v1088_v39, %v1088_v39  ;;  %1102 = vst.msk [vmem:[#allocation2] sm:$0xf] %vm1101_vm9, %v1093_v37  ;;  %v1100_v51 = vpack.c.bf16 %v1092_v49, %v1092_v49 }
 0x373   : > { %v1094_v45 = vpack.c.bf16 %v1086_v47, %v1086_v47  ;;  %v1098_v38 = vpack.c.bf16 %v1090_v48, %v1090_v48  ;;  %1108 = vst.msk [vmem:[#allocation2 + $0x18] sm:$0xf] %vm1101_vm9, %v1099_v32  ;;  %v1149_v0 = vperm.slane %v1143_v42, %v4532_v40  ;;  %v1153_v44 = vperm.slane %v1145_v43, %v4532_v40 }
 0x374   : > { %1105 = vst.msk [vmem:[#allocation2 + $0xc] sm:$0xf] %vm1101_vm9, %v1096_v50  ;;  %v1201_v30 = vsel %vm873_vm8, %v3716_v11, %v4546_v63  ;;  %v1205_v41 = vperm.slane %v1199_v46, %v4532_v40  ;;  %v1212_v52 = vrot.slane %v4564_v5, 4 }
 0x375   : > { %1103 = vst.msk [vmem:[#allocation2 + $0x4] sm:$0xf] %vm1101_vm9, %v1094_v45  ;;  %v1154_v53 = vrot.slane %v1149_v0, 4  ;;  %v1157_v55 = vsel %vm873_vm8, %v1149_v0, %v1156_v25  ;;  %v1209_v57 = vperm.slane %v1201_v30, %v4532_v40  ;;  %v1166_v28 = vrot.slane %v1153_v44, 4 }
 0x376   : > { %1107 = vst.msk [vmem:[#allocation2 + $0x14] sm:$0xf] %vm1101_vm9, %v1098_v38  ;;  %v1165_v61 = vperm.slane %v1157_v55, %v4553_v2  ;;  %v1169_v63 = vsel %vm873_vm8, %v1153_v44, %v1168_v26  ;;  %v1210_v11 = vrot.slane %v1205_v41, 4  ;;  %v1213_v25 = vsel %vm873_vm8, %v1205_v41, %v1212_v52 }
 0x377   : > { %1109 = vst.msk [vmem:[#allocation2 + $0x1c] sm:$0xf] %vm1101_vm9, %v1100_v51  ;;  %v1155_v56 = vsel %vm873_vm8, %v1154_v53, %v4567_v19  ;;  %v1177_v62 = vperm.slane %v1169_v63, %v4553_v2  ;;  %v1222_v3 = vrot.slane %v1209_v57, 4  ;;  %v1167_v6 = vsel %vm873_vm8, %v1166_v28, %v4558_v10 }
 0x378   : > { %v1161_v54 = vperm.slane %v1155_v56, %v4553_v2  ;;  %v1180_v7 = vrot.slane %v1165_v61, 4  ;;  %v1211_v26 = vsel %vm873_vm8, %v1210_v11, %v4564_v5  ;;  %v1173_v8 = vperm.slane %v1167_v6, %v4553_v2 }
 0x379   : > { %v1184_v1 = vrot.slane %v1177_v62, 4  ;;  %v1217_v59 = vperm.slane %v1211_v26, %v4553_v2  ;;  %v1221_v19 = vperm.slane %v1213_v25, %v4553_v2  ;;  %v1223_v12 = vsel %vm873_vm8, %v1222_v3, %v4570_v20 }
 0x37a   : > { %v1178_v9 = vrot.slane %v1161_v54, 4  ;;  %v1181_v60 = vsel %vm873_vm8, 0.0, %v1180_v7  ;;  %v1225_v13 = vsel %vm873_vm8, %v1209_v57, %v1224_v34  ;;  %v1182_v10 = vrot.slane %v1173_v8, 4 }
 0x37b   : > { %v1185_v15 = vsel %vm873_vm8, 0.0, %v1184_v1  ;;  %v1229_v5 = vperm.slane %v1223_v12, %v4553_v2  ;;  %v1233_v16 = vperm.slane %v1225_v13, %v4553_v2  ;;  %v1234_v18 = vrot.slane %v1217_v59, 4 }
 0x37c   : > { %v1179_v17 = vsel %vm873_vm8, 0.0, %v1178_v9  ;;  %v1236_v58 = vrot.slane %v1221_v19, 4  ;;  %v1242_v21 = vsel %vm873_vm8, %v1180_v7, %v1161_v54  ;;  %v1183_v22 = vsel %vm873_vm8, 0.0, %v1182_v10 }
 0x37d   : > { %v1238_v23 = vrot.slane %v1229_v5, 4  ;;  %v1240_v24 = vrot.slane %v1233_v16, 4  ;;  %v1246_v20 = vperm.slane %v1242_v21, %v4532_v40  ;;  %v1235_v27 = vsel %vm873_vm8, 0.0, %v1234_v18 }
 0x37e   : > { %v1237_v14 = vsel %vm873_vm8, 0.0, %v1236_v58  ;;  %v1247_v29 = vrot.slane %v1181_v60, 4  ;;  %v1253_v4 = vsel %vm873_vm8, %v1184_v1, %v1173_v8  ;;  %v1258_v35 = vrot.slane %v1185_v15, 4 }
 0x37f   : > { %v1239_v31 = vsel %vm873_vm8, 0.0, %v1238_v23  ;;  %v1241_v32 = vsel %vm873_vm8, 0.0, %v1240_v24  ;;  %v1257_v33 = vperm.slane %v1253_v4, %v4532_v40  ;;  %v1266_v37 = vrot.slane %v1246_v20, 4 }
 0x380   : > { %v1248_v36 = vsel %vm873_vm8, %v1247_v29, %v1179_v17  ;;  %v1296_v39 = vsel %vm873_vm8, %v1236_v58, %v1217_v59  ;;  %v1301_v42 = vrot.slane %v1237_v14, 4  ;;  %v1259_v46 = vsel %vm873_vm8, %v1258_v35, %v1183_v22 }
 0x381   : > { %v1252_v43 = vperm.slane %v1248_v36, %v4532_v40  ;;  %v1278_v47 = vrot.slane %v1257_v33, 4  ;;  %v1300_v48 = vperm.slane %v1296_v39, %v4532_v40  ;;  %v1263_v49 = vperm.slane %v1259_v46, %v4532_v40 }
 0x382   : > { %v1302_v50 = vsel %vm873_vm8, %v1301_v42, %v1235_v27  ;;  %v1307_v45 = vsel %vm873_vm8, %v1240_v24, %v1229_v5  ;;  %v1312_v38 = vrot.slane %v1241_v32, 4 }
 0x383   : > { %v1264_v51 = vrot.slane %v1252_v43, 4  ;;  %v1267_v0 = vsel %vm873_vm8, %v1252_v43, %v1266_v37  ;;  %v1306_v34 = vperm.slane %v1302_v50, %v4532_v40  ;;  %v1311_v44 = vperm.slane %v1307_v45, %v4532_v40 }
 0x384   : > { %v1275_v30 = vperm.slane %v1267_v0, %v4553_v2  ;;  %v1276_v41 = vrot.slane %v1263_v49, 4  ;;  %v1279_v52 = vsel %vm873_vm8, %v1263_v49, %v1278_v47  ;;  %v1313_v53 = vsel %vm873_vm8, %v1312_v38, %v1239_v31 }
 0x385   : > { %v1265_v55 = vsel %vm873_vm8, %v1264_v51, %v1246_v20  ;;  %v1287_v57 = vperm.slane %v1279_v52, %v4553_v2  ;;  %v1317_v61 = vperm.slane %v1313_v53, %v4532_v40  ;;  %v1318_v28 = vrot.slane %v1306_v34, 4 }
 0x386   : > { %v1271_v63 = vperm.slane %v1265_v55, %v4553_v2  ;;  %v1277_v11 = vsel %vm873_vm8, %v1276_v41, %v1257_v33  ;;  %v1294_v56 = vrot.slane %v1275_v30, 4  ;;  %v1320_v62 = vrot.slane %v1300_v48, 4 }
 0x387   : > { %v1283_v25 = vperm.slane %v1277_v11, %v4553_v2  ;;  %v1292_v3 = vrot.slane %v1287_v57, 4  ;;  %v1319_v54 = vsel %vm873_vm8, %v1318_v28, %v1300_v48  ;;  %v1330_v6 = vrot.slane %v1317_v61, 4 }
 0x388   : > { %v1290_v7 = vrot.slane %v1271_v63, 4  ;;  %v1295_v26 = vsel %vm873_vm8, %v1287_v57, %v1294_v56  ;;  %v1321_v8 = vsel %vm873_vm8, %v1306_v34, %v1320_v62  ;;  %v1325_v40 = vperm.slane %v1319_v54, %v4553_v2 }
 0x389   : > { %v1288_v1 = vrot.slane %v1283_v25, 4  ;;  %v1293_v59 = vsel %vm873_vm8, %v1292_v3, %v1275_v30  ;;  %v1329_v19 = vperm.slane %v1321_v8, %v4553_v2  ;;  %v1331_v9 = vsel %vm873_vm8, %v1330_v6, %v1311_v44 }
 0x38a   : > { %v1291_v60 = vsel %vm873_vm8, %v1283_v25, %v1290_v7  ;;  %v1332_v12 = vrot.slane %v1311_v44, 4  ;;  %v1337_v13 = vperm.slane %v1331_v9, %v4553_v2  ;;  %v1344_v10 = vrot.slane %v1325_v40, 4 }
 0x38b   : > { %v1289_v15 = vsel %vm873_vm8, %v1288_v1, %v1271_v63  ;;  %v1348_v5 = vrot.slane %v1329_v19, 4  ;;  %v1352_v16 = vpack.c.bf16 %v1291_v60, %v1291_v60  ;;  %v1354_v17 = vpack.c.bf16 %v1293_v59, %v1293_v59 }
 0x38c   : > { %v1333_v18 = vsel %vm873_vm8, %v1317_v61, %v1332_v12  ;;  %v1342_v58 = vrot.slane %v1337_v13, 4  ;;  %v1345_v21 = vsel %vm873_vm8, %v1337_v13, %v1344_v10  ;;  %v1350_v22 = vpack.c.bf16 %v1289_v15, %v1289_v15 }
 0x38d   : > { %v1341_v23 = vperm.slane %v1333_v18, %v4553_v2  ;;  %v1353_v24 = vpack.c.bf16 %v1345_v21, %v1345_v21  ;;  %1360 = vst.msk [vmem:[#allocation3 + $0x8] sm:$0xf] %vm1101_vm9, %v1352_v16  ;;  %v1356_v27 = vpack.c.bf16 %v1295_v26, %v1295_v26 }
 0x38e   : > { %v1343_v20 = vsel %vm873_vm8, %v1342_v58, %v1325_v40  ;;  %1358 = vst.msk [vmem:[#allocation3] sm:$0xf] %vm1101_vm9, %v1350_v22 }
 0x38f   : > { %v1346_v14 = vrot.slane %v1341_v23, 4  ;;  %v1349_v29 = vsel %vm873_vm8, %v1341_v23, %v1348_v5  ;;  %v1351_v4 = vpack.c.bf16 %v1343_v20, %v1343_v20  ;;  %1361 = vst.msk [vmem:[#allocation3 + $0xc] sm:$0xf] %vm1101_vm9, %v1353_v24 }
 0x390   : > { %v1357_v31 = vpack.c.bf16 %v1349_v29, %v1349_v29  ;;  %1362 = vst.msk [vmem:[#allocation3 + $0x10] sm:$0xf] %vm1101_vm9, %v1354_v17 }
 0x391   : > { %v1347_v32 = vsel %vm873_vm8, %v1346_v14, %v1329_v19  ;;  %1359 = vst.msk [vmem:[#allocation3 + $0x4] sm:$0xf] %vm1101_vm9, %v1351_v4 }
 0x392   : > { %v1355_v2 = vpack.c.bf16 %v1347_v32, %v1347_v32  ;;  %1364 = vst.msk [vmem:[#allocation3 + $0x18] sm:$0xf] %vm1101_vm9, %v1356_v27 }
 0x393   : > { %1365 = vst.msk [vmem:[#allocation3 + $0x1c] sm:$0xf] %vm1101_vm9, %v1357_v31 }
 0x394   : > { %1363 = vst.msk [vmem:[#allocation3 + $0x14] sm:$0xf] %vm1101_vm9, %v1355_v2 }
 0x395 PF: > { %v3509_v33 = vld [vmem:[#allocation10 + $0x38] sm:$0xff]  ;;  %v3508_v35 = vld [vmem:[#allocation10 + $0x30] sm:$0xff]  ;;  %v3507_v36 = vld [vmem:[#allocation10 + $0x28] sm:$0xff]  ;;  %s4187_s12 = smov 64   ;;  %s4188_s17 = smov 32   ;;  %vm1496_vm10 = vcmask 1047556  }
 0x396   : > { %1436 = vmatpush.bf16.msra.mxu0 %v3509_v33  ;;  %v3506_v37 = vld [vmem:[#allocation10 + $0x20] sm:$0xff]  ;;  %v3505_v39 = vld [vmem:[#allocation10 + $0x18] sm:$0xff]  ;;  %v3504_v42 = vld [vmem:[#allocation10 + $0x10] sm:$0xff]  ;;  %v4190_v57 = vmov 1983009808   ;;  %vm1975_vm11 = vcmask 261120  }
 0x397   : > { %v3503_v43 = vld [vmem:[#allocation10 + $0x8] sm:$0xff]  ;;  %v3502_v46 = vld [vmem:[#allocation10] sm:$0xff]  ;;  %v1368_v50 = vld [vmem:[%s4463_s14 + $0x10] sm:$0xff]  ;;  %v1501_v61 = vunpack.c.l.s4 %v4190_v57  ;;  %v4191_v21 = vmov 1934713408   ;;  %vm2133_vm12 = vcmask 130048  }
 0x398   : > { %v1366_v47 = vld [vmem:[%s4463_s14] sm:$0xff]  ;;  %v1367_v48 = vld [vmem:[%s4463_s14 + $0x8] sm:$0xff]  ;;  %v1369_v45 = vld [vmem:[%s4463_s14 + $0x18] sm:$0xff]  ;;  %s4189_s14 = smov 96   ;;  %v1525_v22 = vunpack.c.l.s4 %v4191_v21  ;;  %vm2990_vm13 = vcmask 523264   ;;  %vm2995_vm14 = vcmask 785408  }
 0x399   : > { %v1370_v49 = vpack.c.bf16 %v1367_v48, %v1366_v47  ;;  %v1371_v38 = vpack.c.bf16 %v1369_v45, %v1368_v50  ;;  %v4784_v62 = vunpack.c.0.s8 %v1501_v61  ;;  %s5641_s1 = sld [smem:[#allocation24_spill]]  ;;  %s3108_s30 = sshll.u32 %s4483_s9, 4  ;;  %s3109_s30 = int_to_ptr.vmem [resolvable:$true] %s3108_s30 }
 0x39a   : > { %1437 = vmatpush.bf16.msra.mxu0 %v3508_v35  ;;  %s5642_s8 = sld [smem:[#allocation25_spill]]  ;;  %s3094_s22 = scalar_lea.sflag [#allocation6], %s4459_s5 }
 0x39b   : > { %s5643_s6 = sld [smem:[#allocation37_spill]] }
 0x39c   : > { %s5644_s10 = sld [smem:[#allocation40_spill]] }
 0x39e   : > { %1438 = vmatpush.bf16.msra.mxu0 %v3507_v36 }
 0x39f   : > { %s3479_s3 = sshll.u32 %s5641_s1, 2 }
 0x3a0   : > { %s3480_s27 = sshll.u32 %s5642_s8, 3 }
 0x3a1   : > { %s3105_s16 = sadd.s32 %s3480_s27, %s3479_s3 }
 0x3a2   : > { %1439 = vmatpush.bf16.msra.mxu0 %v3506_v37  ;;  %s3481_s29 = sshll.u32 %s3105_s16, 3  ;;  %s5645_s26 = smov %s5644_s10 }
 0x3a3   : > { %s3107_s23 = scalar_lea.hbm %s5644_s10, %s3481_s29 }
 0x3a4   : > { %s3110_s15 = sshll.u32 %s3107_s23, 4  ;;  %s3111_s15 = int_to_ptr.hbm [resolvable:$true] %s3110_s15 }
 0x3a5   : > { %s4052_s7 = sshra.s32 %s3111_s15, 4  ;;  %s4053_s7 = int_to_ptr.hbm [resolvable:$true] %s4052_s7 }
 0x3a6   : > { %1440 = vmatpush.bf16.msra.mxu0 %v3505_v39  ;;  %s4054_s4 = scalar_lea.hbm %s4053_s7, 32  ;;  %p4059_p9 = scmp.lt.s32.totalorder %s4053_s7, %s5645_s26 }
 0x3a7   : > { %p4055_p11 = scmp.ne.s32.totalorder %s4053_s7, %s4054_s4 }
 0x3a9   : > { %p4056_p6 = pnand %p4055_p11, %p4412_p10 }
 0x3aa   : > { %1441 = vmatpush.bf16.msra.mxu0 %v3504_v42  ;;  %v4818_v42 = vunpack.c.0.s8 %v1525_v22 }
 0x3ab   : > { %p4057_p8 = pneg %p4056_p6 }
 0x3ae   : > { %1442 = vmatpush.bf16.msra.mxu0 %v3503_v43 }
 0x3b2   : > { %1443 = vmatpush.bf16.msra.mxu0 %v3502_v46 }
 0x3b5   : > { %1444 = vmatmul.bf16.vlgmr.msra.gmra.mxu0 %v1370_v49 }
 0x3c5   : > { %1449 = vmatmul.bf16.gmra.mxu0 %v1371_v38 }
 0x432   : > { %v1445_v51 = vpop.f32.mrf.mxu0 }
 0x433   : > { %v1498_v11 = vrot.slane %v1445_v51, 4 }
 0x43a   : > { %v1447_v0 = vpop.f32.mrf.mxu0 }
 0x43b   : > { %v3753_v34 = vpack.i.bf16 %v1447_v0, %v1445_v51  ;;  %v1554_v56 = vrot.slane %v1447_v0, 4 }
 0x43d   : > { %3754 = vrot.lane.b32.xlu2 %v3753_v34, %s4187_s12 }
 0x442   : > { %v4773_v44 = vpop.f32.mrf.mxu0 }
 0x443   : > { %v1610_v9 = vrot.slane %v4773_v44, 4 }
 0x445   : > { %3759 = vrot.lane.b32.xlu2 %v3753_v34, %s4188_s17 }
 0x44a   : > { %v4776_v30 = vpop.f32.mrf.mxu0 }
 0x44b   : > { %v3743_v41 = vpack.i.bf16 %v4776_v30, %v4773_v44  ;;  %v1666_v32 = vrot.slane %v4776_v30, 4 }
 0x44d   : > { %3744 = vrot.lane.b32.xlu1 %v3743_v41, %s4188_s17  ;;  %3734 = vrot.lane.b32.xlu0 %v3743_v41, %s4189_s14 }
 0x455   : > { %3749 = vrot.lane.b32.xlu1 %v3753_v34, %s4189_s14  ;;  %3739 = vrot.lane.b32.xlu0 %v3743_v41, %s4187_s12 }
 0x497   : > { %v3755_v52 = vpop.permute.xlu2 %3754 }
 0x498   : > { %v3757_v53 = vunpack.i.h.bf16 %v3755_v52  ;;  %v3756_v55 = vunpack.i.l.bf16 %v3755_v52 }
 0x49a   : > { %v1552_v28 = vrot.slane %v3757_v53, 4  ;;  %v1495_v63 = vrot.slane %v3756_v55, 4  ;;  %v1499_v3 = vsel %vm1496_vm10, %v3756_v55, %v1498_v11  ;;  %v1555_v54 = vsel %vm1496_vm10, %v3757_v53, %v1554_v56 }
 0x49b   : > { %v4793_v12 = vperm.slane %v1499_v3, %v4784_v62  ;;  %v4796_v13 = vperm.slane %v1555_v54, %v4784_v62 }
 0x49c   : > { %v1553_v25 = vsel %vm1496_vm10, %v1552_v28, %v1447_v0  ;;  %v1497_v6 = vsel %vm1496_vm10, %v1495_v63, %v1445_v51 }
 0x49d   : > { %v1559_v60 = vperm.slane %v1553_v25, %v4784_v62  ;;  %v1503_v17 = vperm.slane %v1497_v6, %v4784_v62  ;;  %v1534_v33 = vrot.slane %v4793_v12, 4  ;;  %v1590_v35 = vrot.slane %v4796_v13, 4 }
 0x49f   : > { %v3760_v8 = vpop.permute.xlu2 %3759  ;;  %v1578_v2 = vrot.slane %v1559_v60, 4  ;;  %v1522_v36 = vrot.slane %v1503_v17, 4 }
 0x4a0   : > { %v3762_v18 = vunpack.i.h.bf16 %v3760_v8  ;;  %v3761_v58 = vunpack.i.l.bf16 %v3760_v8 }
 0x4a2   : > { %v1564_v37 = vrot.slane %v3762_v18, 4  ;;  %v1508_v39 = vrot.slane %v3761_v58, 4 }
 0x4bf   : > { %v3745_v7 = vpop.permute.xlu1 %3744  ;;  %v3735_v26 = vpop.permute.xlu0 %3734 }
 0x4c0   : > { %v3747_v40 = vunpack.i.h.bf16 %v3745_v7  ;;  %v3746_v1 = vunpack.i.l.bf16 %v3745_v7  ;;  %v3737_v59 = vunpack.i.h.bf16 %v3735_v26  ;;  %v3736_v19 = vunpack.i.l.bf16 %v3735_v26 }
 0x4c2   : > { %v1676_v10 = vrot.slane %v3747_v40, 4  ;;  %v1620_v15 = vrot.slane %v3746_v1, 4  ;;  %v1678_v5 = vrot.slane %v3737_v59, 4  ;;  %v1622_v16 = vrot.slane %v3736_v19, 4 }
 0x4c4   : > { %v1677_v23 = vsel %vm1496_vm10, %v1676_v10, %v3737_v59  ;;  %v1679_v24 = vsel %vm1496_vm10, %v3747_v40, %v1678_v5  ;;  %v1621_v20 = vsel %vm1496_vm10, %v1620_v15, %v3736_v19  ;;  %v1623_v27 = vsel %vm1496_vm10, %v3746_v1, %v1622_v16 }
 0x4c5   : > { %v4804_v14 = vperm.slane %v1677_v23, %v4784_v62  ;;  %v4807_v29 = vperm.slane %v1679_v24, %v4784_v62  ;;  %v4810_v4 = vperm.slane %v1621_v20, %v4784_v62  ;;  %v4813_v31 = vperm.slane %v1623_v27, %v4784_v62 }
 0x4c7   : > { %v3750_v43 = vpop.permute.xlu1 %3749  ;;  %v3740_v46 = vpop.permute.xlu0 %3739  ;;  %v1688_v45 = vrot.slane %v4804_v14, 4  ;;  %v1700_v38 = vrot.slane %v4807_v29, 4  ;;  %v1632_v51 = vrot.slane %v4810_v4, 4  ;;  %v1644_v0 = vrot.slane %v4813_v31, 4 }
 0x4c8   : > { %v3752_v47 = vunpack.i.h.bf16 %v3750_v43  ;;  %v3751_v48 = vunpack.i.l.bf16 %v3750_v43  ;;  %v3742_v49 = vunpack.i.h.bf16 %v3740_v46  ;;  %v3741_v50 = vunpack.i.l.bf16 %v3740_v46 }
 0x4ca   : > { %v1565_v34 = vsel %vm1496_vm10, %v1564_v37, %v3752_v47  ;;  %v1566_v41 = vrot.slane %v3752_v47, 4  ;;  %v1509_v52 = vsel %vm1496_vm10, %v1508_v39, %v3751_v48  ;;  %v1510_v53 = vrot.slane %v3751_v48, 4 }
 0x4cb   : > { %v1571_v55 = vperm.slane %v1565_v34, %v4784_v62  ;;  %v1515_v57 = vperm.slane %v1509_v52, %v4784_v62  ;;  %v1664_v61 = vrot.slane %v3742_v49, 4  ;;  %v1608_v28 = vrot.slane %v3741_v50, 4 }
 0x4cc   : > { %v1567_v63 = vsel %vm1496_vm10, %v3762_v18, %v1566_v41  ;;  %v1511_v11 = vsel %vm1496_vm10, %v3761_v58, %v1510_v53  ;;  %v1611_v56 = vsel %vm1496_vm10, %v3741_v50, %v1610_v9  ;;  %v1667_v25 = vsel %vm1496_vm10, %v3742_v49, %v1666_v32  ;;  %v3511_v50 = vld [vmem:[#allocation2 + $0x8] sm:$0xff] }
 0x4cd   : > { %v1575_v3 = vperm.slane %v1567_v63, %v4784_v62  ;;  %v1576_v54 = vrot.slane %v1571_v55, 4  ;;  %v1579_v6 = vsel %vm1496_vm10, %v1571_v55, %v1578_v2  ;;  %v1519_v7 = vperm.slane %v1511_v11, %v4784_v62 }
 0x4ce   : > { %v1587_v26 = vperm.slane %v1579_v6, %v4818_v42  ;;  %v1520_v8 = vrot.slane %v1515_v57, 4  ;;  %v1523_v40 = vsel %vm1496_vm10, %v1515_v57, %v1522_v36  ;;  %v1665_v1 = vsel %vm1496_vm10, %v1664_v61, %v4776_v30 }
 0x4cf   : > { %v1577_v59 = vsel %vm1496_vm10, %v1576_v54, %v1559_v60  ;;  %v1588_v19 = vrot.slane %v1575_v3, 4  ;;  %v1591_v9 = vsel %vm1496_vm10, %v1575_v3, %v1590_v35  ;;  %v1531_v10 = vperm.slane %v1523_v40, %v4818_v42 }
 0x4d0   : > { %v1583_v15 = vperm.slane %v1577_v59, %v4818_v42  ;;  %v1599_v5 = vperm.slane %v1591_v9, %v4818_v42  ;;  %v1602_v16 = vrot.slane %v1587_v26, 4  ;;  %v1521_v18 = vsel %vm1496_vm10, %v1520_v8, %v1503_v17 }
 0x4d1   : > { %v1589_v58 = vsel %vm1496_vm10, %v1588_v19, %v4796_v13  ;;  %v1527_v30 = vperm.slane %v1521_v18, %v4818_v42  ;;  %v1532_v21 = vrot.slane %v1519_v7, 4  ;;  %v1535_v60 = vsel %vm1496_vm10, %v1519_v7, %v1534_v33 }
 0x4d2   : > { %v4850_v22 = vperm.slane %v1589_v58, %v4818_v42  ;;  %v1600_v23 = vrot.slane %v1583_v15, 4  ;;  %v1603_v24 = vsel %vm1496_vm10, 0.0, %v1602_v16  ;;  %v4853_v20 = vrot.slane %v1599_v5, 4 }
 0x4d3   : > { %v4856_v27 = vsel %vm1496_vm10, %v1602_v16, %v1583_v15  ;;  %v1779_v17 = vrot.slane %v1603_v24, 4  ;;  %v1533_v13 = vsel %vm1496_vm10, %v1532_v21, %v4793_v12  ;;  %v1543_v32 = vperm.slane %v1535_v60, %v4818_v42 }
 0x4d4   : > { %v1601_v2 = vsel %vm1496_vm10, 0.0, %v1600_v23  ;;  %v1604_v33 = vrot.slane %v4850_v22, 4  ;;  %v4865_v35 = vsel %vm1496_vm10, 0.0, %v4853_v20  ;;  %v4868_v36 = vperm.slane %v1533_v13, %v4818_v42  ;;  %v3510_v23 = vld [vmem:[#allocation2] sm:$0xff] }
 0x4d5   : > { %v4871_v37 = vsel %vm1496_vm10, %v1779_v17, %v1601_v2  ;;  %v1790_v39 = vrot.slane %v4865_v35, 4  ;;  %v1544_v43 = vrot.slane %v1527_v30, 4  ;;  %v1546_v12 = vrot.slane %v1531_v10, 4 }
 0x4d6   : > { %v4875_v46 = vsel %vm1496_vm10, 0.0, %v1604_v33  ;;  %v1548_v47 = vrot.slane %v4868_v36, 4  ;;  %v4878_v48 = vrot.slane %v1543_v32, 4  ;;  %v1671_v49 = vperm.slane %v1665_v1, %v4784_v62 }
 0x4d7   : > { %v1545_v34 = vsel %vm1496_vm10, 0.0, %v1544_v43  ;;  %v1547_v41 = vsel %vm1496_vm10, 0.0, %v1546_v12  ;;  %v1720_v52 = vsel %vm1496_vm10, %v1546_v12, %v1527_v30  ;;  %v1609_v53 = vsel %vm1496_vm10, %v1608_v28, %v4773_v44 }
 0x4d8   : > { %v1549_v55 = vsel %vm1496_vm10, 0.0, %v1548_v47  ;;  %v1551_v57 = vsel %vm1496_vm10, 0.0, %v4878_v48  ;;  %v1725_v61 = vrot.slane %v1547_v41, 4  ;;  %v1690_v63 = vrot.slane %v1671_v49, 4 }
 0x4d9   : > { %v1736_v11 = vrot.slane %v1551_v57, 4  ;;  %v1615_v3 = vperm.slane %v1609_v53, %v4784_v62  ;;  %v1619_v54 = vperm.slane %v1611_v56, %v4784_v62  ;;  %v1675_v6 = vperm.slane %v1667_v25, %v4784_v62 }
 0x4da   : > { %v1726_v7 = vsel %vm1496_vm10, %v1725_v61, %v1545_v34  ;;  %v1689_v44 = vsel %vm1496_vm10, %v1688_v45, %v1671_v49  ;;  %v1691_v28 = vsel %vm1496_vm10, %v4804_v14, %v1690_v63  ;;  %v2026_v26 = vsel %vm1975_vm11, %v3511_v50, 0 }
 0x4db   : > { %v1633_v8 = vsel %vm1496_vm10, %v1632_v51, %v1615_v3  ;;  %v1634_v40 = vrot.slane %v1615_v3, 4  ;;  %v1645_v56 = vsel %vm1496_vm10, %v1644_v0, %v1619_v54  ;;  %v1646_v25 = vrot.slane %v1619_v54, 4  ;;  %2035 = vmatpush.bf16.xpose.msra.mxu2 %v2026_v26 }
 0x4dc   : > { %v4906_v1 = vperm.slane %v1633_v8, %v4818_v42  ;;  %v1651_v45 = vperm.slane %v1645_v56, %v4818_v42  ;;  %v4910_v14 = vperm.slane %v1689_v44, %v4818_v42  ;;  %v1699_v59 = vperm.slane %v1691_v28, %v4818_v42 }
 0x4dd   : > { %v1635_v51 = vsel %vm1496_vm10, %v4810_v4, %v1634_v40  ;;  %v1647_v19 = vsel %vm1496_vm10, %v4813_v31, %v1646_v25  ;;  %v1701_v0 = vsel %vm1496_vm10, %v1700_v38, %v1675_v6  ;;  %v1702_v9 = vrot.slane %v1675_v6, 4 }
 0x4de   : > { %v1643_v10 = vperm.slane %v1635_v51, %v4818_v42  ;;  %v1655_v15 = vperm.slane %v1647_v19, %v4818_v42  ;;  %v1656_v5 = vrot.slane %v4906_v1, 4  ;;  %v1660_v16 = vrot.slane %v1651_v45, 4 }
 0x4df   : > { %v1703_v18 = vsel %vm1496_vm10, %v4807_v29, %v1702_v9  ;;  %v1707_v4 = vperm.slane %v1701_v0, %v4818_v42  ;;  %v1712_v58 = vrot.slane %v4910_v14, 4  ;;  %v4927_v31 = vrot.slane %v1699_v59, 4 }
 0x4e0   : > { %v1657_v30 = vsel %vm1496_vm10, 0.0, %v1656_v5  ;;  %v1658_v38 = vrot.slane %v1643_v10, 4  ;;  %v1661_v21 = vsel %vm1496_vm10, 0.0, %v1660_v16  ;;  %v1662_v60 = vrot.slane %v1655_v15, 4 }
 0x4e1   : > { %v1711_v24 = vperm.slane %v1703_v18, %v4818_v42  ;;  %v1713_v17 = vsel %vm1496_vm10, 0.0, %v1712_v58  ;;  %v1715_v29 = vsel %vm1496_vm10, 0.0, %v4927_v31  ;;  %v1716_v13 = vrot.slane %v1707_v4, 4 }
 0x4e2   : > { %v1659_v32 = vsel %vm1496_vm10, 0.0, %v1658_v38  ;;  %v1663_v2 = vsel %vm1496_vm10, 0.0, %v1662_v60  ;;  %v1839_v33 = vsel %vm1496_vm10, %v1662_v60, %v1651_v45  ;;  %v1887_v43 = vrot.slane %v1715_v29, 4 }
 0x4e3   : > { %v1717_v12 = vsel %vm1496_vm10, 0.0, %v1716_v13  ;;  %v1718_v47 = vrot.slane %v1711_v24, 4  ;;  %v1833_v49 = vrot.slane %v1659_v32, 4  ;;  %v4940_v50 = vperm.slane %v1839_v33, %v4784_v62 }
 0x4e4   : > { %v1844_v34 = vrot.slane %v1663_v2, 4  ;;  %v1983_v41 = vsel %vm1975_vm11, %v3510_v23, 0  ;;  %v4944_v53 = vperm.slane %v1720_v52, %v4784_v62  ;;  %v4947_v57 = vperm.slane %v1726_v7, %v4784_v62 }
 0x4e5   : > { %v1719_v61 = vsel %vm1496_vm10, 0.0, %v1718_v47  ;;  %v1893_v63 = vsel %vm1496_vm10, %v1718_v47, %v1707_v4  ;;  %1992 = vmatpush.bf16.xpose.msra.mxu1 %v1983_v41  ;;  %3526 = vmatpush.bf16.xpose.msra.mxu3 %v1983_v41  ;;  %v1731_v3 = vsel %vm1496_vm10, %v4878_v48, %v4868_v36  ;;  %v1737_v54 = vsel %vm1496_vm10, %v1736_v11, %v1549_v55 }
 0x4e6   : > { %v1845_v6 = vsel %vm1496_vm10, %v1844_v34, %v1661_v21  ;;  %v4957_v52 = vperm.slane %v1893_v63, %v4784_v62  ;;  %v1898_v44 = vrot.slane %v1719_v61, 4  ;;  %v4960_v7 = vperm.slane %v1731_v3, %v4784_v62 }
 0x4e7   : > { %v4963_v28 = vperm.slane %v1845_v6, %v4784_v62  ;;  %v4966_v26 = vperm.slane %v1737_v54, %v4784_v62  ;;  %v1742_v8 = vrot.slane %v4947_v57, 4  ;;  %v4971_v36 = vperm.slane %v4856_v27, %v4784_v62 }
 0x4e8   : > { %v1899_v48 = vsel %vm1496_vm10, %v1898_v44, %v1717_v12  ;;  %v1756_v55 = vrot.slane %v4960_v7, 4  ;;  %v4977_v11 = vperm.slane %v4871_v37, %v4784_v62  ;;  %v1785_v40 = vsel %vm1496_vm10, %v4853_v20, %v4850_v22 }
 0x4e9   : > { %v4983_v56 = vperm.slane %v1899_v48, %v4784_v62  ;;  %v1743_v25 = vsel %vm1496_vm10, %v1742_v8, %v4944_v53  ;;  %v1754_v27 = vrot.slane %v4966_v26, 4  ;;  %v4989_v45 = vperm.slane %v1785_v40, %v4784_v62 }
 0x4ea   : > { %v1749_v59 = vperm.slane %v1743_v25, %v4818_v42  ;;  %v1791_v37 = vsel %vm1496_vm10, %v1790_v39, %v4875_v46  ;;  %v1796_v22 = vrot.slane %v4977_v11, 4  ;;  %v1828_v20 = vsel %vm1496_vm10, %v1658_v38, %v4906_v1 }
 0x4eb   : > { %v1755_v51 = vsel %vm1496_vm10, %v1754_v27, %v4960_v7  ;;  %v5002_v19 = vperm.slane %v1791_v37, %v4784_v62  ;;  %v1810_v0 = vrot.slane %v4989_v45, 4  ;;  %v5006_v9 = vperm.slane %v1828_v20, %v4784_v62 }
 0x4ec   : > { %v1761_v35 = vperm.slane %v1755_v51, %v4818_v42  ;;  %v1768_v10 = vrot.slane %v1749_v59, 4  ;;  %v1797_v39 = vsel %vm1496_vm10, %v1796_v22, %v4971_v36  ;;  %v1834_v46 = vsel %vm1496_vm10, %v1833_v49, %v1657_v30 }
 0x4ed   : > { %v1803_v1 = vperm.slane %v1797_v39, %v4818_v42  ;;  %v1808_v15 = vrot.slane %v5002_v19, 4  ;;  %v5015_v5 = vperm.slane %v1834_v46, %v4784_v62  ;;  %v1862_v16 = vrot.slane %v4963_v28, 4 }
 0x4ee   : > { %v1769_v18 = vsel %vm1496_vm10, %v1761_v35, %v1768_v10  ;;  %v1766_v4 = vrot.slane %v1761_v35, 4  ;;  %v1882_v58 = vsel %vm1496_vm10, %v4927_v31, %v4910_v14  ;;  %v1888_v38 = vsel %vm1496_vm10, %v1887_v43, %v1713_v17  ;;  %v3512_v14 = vld [vmem:[#allocation2 + $0x10] sm:$0xff]  ;;  %v3513_v31 = vld [vmem:[#allocation2 + $0x18] sm:$0xff] }
 0x4ef   : > { %v1809_v30 = vsel %vm1496_vm10, %v1808_v15, %v4989_v45  ;;  %v1822_v21 = vrot.slane %v1803_v1, 4  ;;  %v1940_v60 = vpack.c.bf16 %v1769_v18, %v1769_v18  ;;  %v1850_v23 = vrot.slane %v5015_v5, 4 }
 0x4f0   : > { %v1815_v24 = vperm.slane %v1809_v30, %v4818_v42  ;;  %v1767_v29 = vsel %vm1496_vm10, %v1766_v4, %v1749_v59  ;;  %v1863_v13 = vsel %vm1496_vm10, %v1862_v16, %v4940_v50  ;;  %v5031_v32 = vperm.slane %v1882_v58, %v4784_v62 }
 0x4f1   : > { %v2008_v17 = vunpack.c.l.b16 %v1940_v60  ;;  %v1936_v2 = vpack.c.bf16 %v1767_v29, %v1767_v29  ;;  %v1851_v33 = vsel %vm1496_vm10, %v1850_v23, %v5006_v9  ;;  %v1869_v43 = vperm.slane %v1863_v13, %v4818_v42 }
 0x4f2   : > { %v1823_v12 = vsel %vm1496_vm10, %v1815_v24, %v1822_v21  ;;  %v1820_v47 = vrot.slane %v1815_v24, 4  ;;  %v1857_v49 = vperm.slane %v1851_v33, %v4818_v42  ;;  %v5039_v34 = vperm.slane %v1888_v38, %v4784_v62 }
 0x4f3   : > { %v1941_v41 = vpack.c.bf16 %v1823_v12, %v1823_v12  ;;  %v1964_v61 = vunpack.c.l.b16 %v1936_v2  ;;  %v1874_v63 = vrot.slane %v1869_v43, 4  ;;  %v1916_v3 = vrot.slane %v4983_v56, 4 }
 0x4f4   : > { %v1821_v54 = vsel %vm1496_vm10, %v1820_v47, %v1803_v1  ;;  %v1904_v6 = vrot.slane %v5039_v34, 4  ;;  %v2069_v44 = vsel %vm1975_vm11, %v3512_v14, 0  ;;  %v2112_v8 = vsel %vm1975_vm11, %v3513_v31, 0 }
 0x4f5   : > { %v2009_v48 = vunpack.c.l.b16 %v1941_v41  ;;  %v1937_v40 = vpack.c.bf16 %v1821_v54, %v1821_v54  ;;  %v1875_v25 = vsel %vm1496_vm10, %v1874_v63, %v1857_v49  ;;  %v1917_v27 = vsel %vm1496_vm10, %v1916_v3, %v4957_v52  ;;  %2078 = vmatpush.bf16.xpose.msrb.mxu3 %v2069_v44  ;;  %2121 = vmatpush.bf16.xpose.msrb.mxu1 %v2112_v8 }
 0x4f6   : > { %v1905_v59 = vsel %vm1496_vm10, %v1904_v6, %v5031_v32  ;;  %v1923_v37 = vperm.slane %v1917_v27, %v4818_v42  ;;  %v1938_v22 = vpack.c.bf16 %v1875_v25, %v1875_v25  ;;  %v1876_v20 = vrot.slane %v1857_v49, 4 }
 0x4f7   : > { %v2012_v51 = vpack.c.b16 %v2009_v48, %v2008_v17  ;;  %v1965_v35 = vunpack.c.l.b16 %v1937_v40  ;;  %v1911_v10 = vperm.slane %v1905_v59, %v4818_v42  ;;  %v1744_v39 = vrot.slane %v4944_v53, 4 }
 0x4f8   : > { %v1928_v46 = vrot.slane %v1923_v37, 4  ;;  %v1757_v1 = vsel %vm1496_vm10, %v4966_v26, %v1756_v55  ;;  %v1966_v16 = vunpack.c.l.b16 %v1938_v22  ;;  %v1877_v38 = vsel %vm1496_vm10, %v1869_v43, %v1876_v20 }
 0x4f9   : > { %3408 = vmatmul.msk.bf16.vlgmr.msra.gmra.mxu2 %vm1975_vm11, %v2012_v51  ;;  %v1968_v15 = vpack.c.b16 %v1965_v35, %v1964_v61  ;;  %v1930_v18 = vrot.slane %v1911_v10, 4  ;;  %v1745_v4 = vsel %vm1496_vm10, %v4947_v57, %v1744_v39  ;;  %v1798_v30 = vrot.slane %v4971_v36, 4 }
 0x4fa   : > { %v1929_v58 = vsel %vm1496_vm10, %v1928_v46, %v1911_v10  ;;  %v1753_v53 = vperm.slane %v1745_v4, %v4818_v42  ;;  %v1765_v55 = vperm.slane %v1757_v1, %v4818_v42  ;;  %v1811_v57 = vsel %vm1496_vm10, %v5002_v19, %v1810_v0 }
 0x4fb   : > { %3402 = vmatmul.msk.bf16.vlgmr.msra.gmra.mxu1 %vm1975_vm11, %v1968_v15  ;;  %v1939_v7 = vpack.c.bf16 %v1929_v58, %v1929_v58  ;;  %v1931_v26 = vsel %vm1496_vm10, %v1923_v37, %v1930_v18  ;;  %v1799_v21 = vsel %vm1496_vm10, %v4977_v11, %v1798_v30  ;;  %v1819_v60 = vperm.slane %v1811_v57, %v4818_v42 }
 0x4fc   : > { %v1807_v36 = vperm.slane %v1799_v21, %v4818_v42  ;;  %v1772_v24 = vrot.slane %v1753_v53, 4  ;;  %v1942_v29 = vpack.c.bf16 %v1877_v38, %v1877_v38  ;;  %v1943_v13 = vpack.c.bf16 %v1931_v26, %v1931_v26 }
 0x4fd   : > { %v1967_v23 = vunpack.c.l.b16 %v1939_v7  ;;  %v1852_v45 = vrot.slane %v5006_v9, 4  ;;  %v1770_v2 = vrot.slane %v1765_v55, 4  ;;  %v1824_v33 = vrot.slane %v1819_v60, 4 }
 0x4fe   : > { %v1773_v31 = vsel %vm1496_vm10, %v1765_v55, %v1772_v24  ;;  %v1826_v17 = vrot.slane %v1807_v36, 4  ;;  %v1906_v43 = vrot.slane %v5031_v32, 4  ;;  %v2010_v12 = vunpack.c.l.b16 %v1942_v29 }
 0x4ff   : > { %v1969_v14 = vpack.c.b16 %v1967_v23, %v1966_v16  ;;  %v1948_v19 = vpack.c.bf16 %v1773_v31, %v1773_v31  ;;  %v2011_v47 = vunpack.c.l.b16 %v1943_v13  ;;  %v1853_v49 = vsel %vm1496_vm10, %v5015_v5, %v1852_v45 }
 0x500   : > { %v1827_v11 = vsel %vm1496_vm10, %v1819_v60, %v1826_v17  ;;  %v1771_v41 = vsel %vm1496_vm10, %v1770_v2, %v1753_v53  ;;  %v1825_v61 = vsel %vm1496_vm10, %v1824_v33, %v1807_v36  ;;  %v1907_v9 = vsel %vm1496_vm10, %v5039_v34, %v1906_v43 }
 0x501   : > { %3403 = vmatmul.msk.bf16.vlgmr.msra.gmra.mxu3 %vm1975_vm11, %v1969_v14  ;;  %v1949_v0 = vpack.c.bf16 %v1827_v11, %v1827_v11  ;;  %v2094_v63 = vunpack.c.l.b16 %v1948_v19  ;;  %v1864_v54 = vrot.slane %v4940_v50, 4  ;;  %v1918_v6 = vrot.slane %v4957_v52, 4 }
 0x502   : > { %v1861_v32 = vperm.slane %v1853_v49, %v4818_v42  ;;  %v1915_v44 = vperm.slane %v1907_v9, %v4818_v42  ;;  %v2013_v8 = vpack.c.b16 %v2011_v47, %v2010_v12  ;;  %v1944_v48 = vpack.c.bf16 %v1771_v41, %v1771_v41 }
 0x503   : > { %v2095_v3 = vunpack.c.l.b16 %v1949_v0  ;;  %v1945_v5 = vpack.c.bf16 %v1825_v61, %v1825_v61  ;;  %v1865_v25 = vsel %vm1496_vm10, %v4963_v28, %v1864_v54  ;;  %v1919_v34 = vsel %vm1496_vm10, %v4983_v56, %v1918_v6 }
 0x504   : > { %v1880_v27 = vrot.slane %v1861_v32, 4  ;;  %v1934_v50 = vrot.slane %v1915_v44, 4  ;;  %v2051_v59 = vunpack.c.l.b16 %v1944_v48  ;;  %v1873_v37 = vperm.slane %v1865_v25, %v4818_v42 }
 0x505   : > { %v2098_v40 = vpack.c.b16 %v2095_v3, %v2094_v63  ;;  %v2052_v52 = vunpack.c.l.b16 %v1945_v5  ;;  %v1927_v22 = vperm.slane %v1919_v34, %v4818_v42 }
 0x506   : > { %v1881_v20 = vsel %vm1496_vm10, %v1873_v37, %v1880_v27  ;;  %v1878_v10 = vrot.slane %v1873_v37, 4 }
 0x507   : > { %v1935_v51 = vsel %vm1496_vm10, %v1927_v22, %v1934_v50  ;;  %v2055_v35 = vpack.c.b16 %v2052_v52, %v2051_v59  ;;  %v1932_v28 = vrot.slane %v1927_v22, 4  ;;  %v1950_v56 = vpack.c.bf16 %v1881_v20, %v1881_v20 }
 0x508   : > { %v1951_v39 = vpack.c.bf16 %v1935_v51, %v1935_v51  ;;  %v1879_v46 = vsel %vm1496_vm10, %v1878_v10, %v1861_v32 }
 0x509   : > { %3409 = vmatmul.msk.bf16.gmra.mxu2 %vm1975_vm11, %v2013_v8  ;;  %v1933_v1 = vsel %vm1496_vm10, %v1932_v28, %v1915_v44  ;;  %v2096_v15 = vunpack.c.l.b16 %v1950_v56  ;;  %v1946_v18 = vpack.c.bf16 %v1879_v46, %v1879_v46 }
 0x50a   : > { %v2097_v16 = vunpack.c.l.b16 %v1951_v39  ;;  %v1947_v4 = vpack.c.bf16 %v1933_v1, %v1933_v1 }
 0x50b   : > { %3420 = vmatmul.msk.bf16.vlgmr.msrb.gmra.mxu1 %vm1975_vm11, %v2098_v40  ;;  %v2053_v38 = vunpack.c.l.b16 %v1946_v18 }
 0x50c   : > { %v2099_v58 = vpack.c.b16 %v2097_v16, %v2096_v15  ;;  %v2054_v53 = vunpack.c.l.b16 %v1947_v4 }
 0x50e   : > { %v2056_v30 = vpack.c.b16 %v2054_v53, %v2053_v38 }
 0x511   : > { %3414 = vmatmul.msk.bf16.vlgmr.msrb.gmra.mxu3 %vm1975_vm11, %v2055_v35 }
 0x51b   : > { %3421 = vmatmul.msk.bf16.gmra.mxu1 %vm1975_vm11, %v2099_v58 }
 0x521   : > { %3415 = vmatmul.msk.bf16.gmra.mxu3 %vm1975_vm11, %v2056_v30 }
 0x578   : > { %v1994_v7 = vpop.f32.mrf.mxu1 }
 0x579   : > { %v2134_v26 = vsel %vm2133_vm12, %v1994_v7, -inf }
 0x57a   : > { %2135 = vmax.xlane.f32.xlu0 %v2134_v26 }
 0x57c   : > { %v2037_v55 = vpop.f32.mrf.mxu2 }
 0x57d   : > { %v2146_v57 = vsel %vm2133_vm12, %v2037_v55, -inf }
 0x57e   : > { %2147 = vmax.xlane.f32.xlu2 %v2146_v57 }
 0x580   : > { %v1996_v21 = vpop.f32.mrf.mxu1 }
 0x581   : > { %v2137_v60 = vsel %vm2133_vm12, %v1996_v21, -inf }
 0x582   : > { %2138 = vmax.xlane.f32.xlu1 %v2137_v60 }
 0x584   : > { %v5109_v23 = vpop.f32.mrf.mxu3  ;;  %v2039_v36 = vpop.f32.mrf.mxu2 }
 0x585   : > { %v2149_v24 = vsel %vm2133_vm12, %v2039_v36, -inf  ;;  %v2140_v49 = vsel %vm2133_vm12, %v5109_v23, -inf }
 0x586   : > { %2150 = vmax.xlane.f32.xlu2 %v2149_v24 }
 0x588   : > { %v5112_v29 = vpop.f32.mrf.mxu1 }
 0x589   : > { %v2170_v14 = vsel %vm2133_vm12, %v5112_v29, -inf }
 0x58c   : > { %v5114_v13 = vpop.f32.mrf.mxu3  ;;  %v5132_v0 = vpop.f32.mrf.mxu2 }
 0x58d   : > { %v2143_v2 = vsel %vm2133_vm12, %v5114_v13, -inf  ;;  %v2152_v12 = vsel %vm2133_vm12, %v5132_v0, -inf }
 0x58e   : > { %2171 = vmax.xlane.f32.xlu2 %v2170_v14 }
 0x590   : > { %v5118_v31 = vpop.f32.mrf.mxu1 }
 0x591   : > { %v2173_v17 = vsel %vm2133_vm12, %v5118_v31, -inf }
 0x592   : > { %2174 = vmax.xlane.f32.xlu0 %v2173_v17 }
 0x594   : > { %v5122_v45 = vpop.f32.mrf.mxu3  ;;  %v5144_v61 = vpop.f32.mrf.mxu2 }
 0x595   : > { %v2158_v33 = vsel %vm2133_vm12, %v5122_v45, -inf  ;;  %v2155_v3 = vsel %vm2133_vm12, %v5144_v61, -inf }
 0x596   : > { %2144 = vmax.xlane.f32.xlu2 %v2143_v2 }
 0x598   : > { %v5134_v43 = vpop.f32.mrf.mxu1 }
 0x599   : > { %v2176_v32 = vsel %vm2133_vm12, %v5134_v43, -inf }
 0x59a   : > { %2159 = vmax.xlane.f32.xlu0 %v2158_v33 }
 0x59c   : > { %v5128_v11 = vpop.f32.mrf.mxu3 }
 0x59d   : > { %v2161_v19 = vsel %vm2133_vm12, %v5128_v11, -inf }
 0x59e   : > { %2162 = vmax.xlane.f32.xlu1 %v2161_v19 }
 0x5a0   : > { %v5146_v9 = vpop.f32.mrf.mxu1 }
 0x5a1   : > { %v2179_v54 = vsel %vm2133_vm12, %v5146_v9, -inf }
 0x5a2   : > { %2153 = vmax.xlane.f32.xlu0 %v2152_v12 }
 0x5a4   : > { %v5138_v47 = vpop.f32.mrf.mxu3 }
 0x5a5   : > { %v2164_v41 = vsel %vm2133_vm12, %v5138_v47, -inf }
 0x5a6   : > { %2141 = vmax.xlane.f32.xlu1 %v2140_v49  ;;  %2165 = vmax.xlane.f32.xlu2 %v2164_v41 }
 0x5ac   : > { %v5148_v63 = vpop.f32.mrf.mxu3 }
 0x5ad   : > { %v2167_v6 = vsel %vm2133_vm12, %v5148_v63, -inf }
 0x5ae   : > { %2156 = vmax.xlane.f32.xlu1 %v2155_v3  ;;  %2180 = vmax.xlane.f32.xlu2 %v2179_v54 }
 0x5af   : > { %2168 = vmax.xlane.f32.xlu0 %v2167_v6 }
 0x5b6   : > { %2177 = vmax.xlane.f32.xlu1 %v2176_v32 }
 0x5ed   : > { %v2136_v44 = vpop.xlane.xlu0 %2135 }
 0x5ee   : > { %v2182_v8 = vsub.f32 %v1994_v7, %v2136_v44 }
 0x5f0   : > { %v2198_v48 = vmul.f32 1.442695, %v2182_v8 }
 0x5f1   : > { %v2148_v5 = vpop.xlane.xlu2 %2147 }
 0x5f2   : > { %3794 = vpow2.f32 %v2198_v48  ;;  %v2186_v40 = vsub.f32 %v2037_v55, %v2148_v5 }
 0x5f4   : > { %v2206_v25 = vmul.f32 1.442695, %v2186_v40 }
 0x5f5   : > { %v2139_v34 = vpop.xlane.xlu1 %2138 }
 0x5f6   : > { %3796 = vpow2.f32 %v2206_v25  ;;  %v2183_v27 = vsub.f32 %v1996_v21, %v2139_v34 }
 0x5f8   : > { %v5158_v50 = vpop.eup %3794  ;;  %v2200_v59 = vmul.f32 1.442695, %v2183_v27 }
 0x5f9   : > { %v2151_v52 = vpop.xlane.xlu2 %2150  ;;  %v2230_v37 = vsel %vm2133_vm12, %v5158_v50, 0.0 }
 0x5fa   : > { %3798 = vpow2.f32 %v2200_v59  ;;  %v2187_v22 = vsub.f32 %v2039_v36, %v2151_v52  ;;  %2231 = vadd.xlane.f32.xlu0 %v2230_v37 }
 0x5fc   : > { %v5162_v20 = vpop.eup %3796  ;;  %v2208_v51 = vmul.f32 1.442695, %v2187_v22 }
 0x5fd   : > { %v2242_v35 = vsel %vm2133_vm12, %v5162_v20, 0.0 }
 0x5fe   : > { %3800 = vpow2.f32 %v2208_v51  ;;  %2243 = vadd.xlane.f32.xlu2 %v2242_v35 }
 0x600   : > { %v5166_v10 = vpop.eup %3798 }
 0x601   : > { %v2172_v28 = vpop.xlane.xlu2 %2171  ;;  %v2233_v56 = vsel %vm2133_vm12, %v5166_v10, 0.0 }
 0x602   : > { %v2194_v39 = vsub.f32 %v5112_v29, %v2172_v28  ;;  %2234 = vadd.xlane.f32.xlu1 %v2233_v56 }
 0x604   : > { %v5171_v46 = vpop.eup %3800  ;;  %v2222_v1 = vmul.f32 1.442695, %v2194_v39 }
 0x605   : > { %v2175_v15 = vpop.xlane.xlu0 %2174  ;;  %v2245_v16 = vsel %vm2133_vm12, %v5171_v46, 0.0 }
 0x606   : > { %3802 = vpow2.f32 %v2222_v1  ;;  %v2195_v18 = vsub.f32 %v5118_v31, %v2175_v15  ;;  %2246 = vadd.xlane.f32.xlu0 %v2245_v16  ;;  %v3514_v15 = vld [vmem:[#allocation3] sm:$0xff]  ;;  %v3515_v16 = vld [vmem:[#allocation3 + $0x8] sm:$0xff] }
 0x607   : > { %2363 = vmatpush.bf16.msrb.mxu2 %v3514_v15  ;;  %2404 = vmatpush.bf16.msra.mxu3 %v3515_v16 }
 0x608   : > { %v2224_v4 = vmul.f32 1.442695, %v2195_v18  ;;  %v3516_v18 = vld [vmem:[#allocation3 + $0x10] sm:$0xff] }
 0x609   : > { %v2145_v58 = vpop.xlane.xlu2 %2144  ;;  %2445 = vmatpush.bf16.msrb.mxu0 %v3516_v18 }
 0x60a   : > { %3804 = vpow2.f32 %v2224_v4  ;;  %v2185_v38 = vsub.f32 %v5114_v13, %v2145_v58  ;;  %v3517_v58 = vld [vmem:[#allocation3 + $0x18] sm:$0xff] }
 0x60b   : > { %2486 = vmatpush.bf16.msra.mxu1 %v3517_v58 }
 0x60c   : > { %v5177_v53 = vpop.eup %3802  ;;  %v2204_v30 = vmul.f32 1.442695, %v2185_v38 }
 0x60d   : > { %v2160_v7 = vpop.xlane.xlu0 %2159  ;;  %v2266_v26 = vsel %vm2133_vm12, %v5177_v53, 0.0 }
 0x60e   : > { %3806 = vpow2.f32 %v2204_v30  ;;  %v2190_v55 = vsub.f32 %v5122_v45, %v2160_v7  ;;  %2267 = vadd.xlane.f32.xlu0 %v2266_v26 }
 0x610   : > { %v5182_v57 = vpop.eup %3804  ;;  %v2214_v21 = vmul.f32 1.442695, %v2190_v55 }
 0x611   : > { %v2163_v60 = vpop.xlane.xlu1 %2162  ;;  %v2269_v36 = vsel %vm2133_vm12, %v5182_v57, 0.0 }
 0x612   : > { %v2191_v24 = vsub.f32 %v5128_v11, %v2163_v60  ;;  %3808 = vpow2.f32 %v2214_v21  ;;  %2270 = vadd.xlane.f32.xlu1 %v2269_v36 }
 0x614   : > { %v5187_v29 = vpop.eup %3806  ;;  %v2216_v13 = vmul.f32 1.442695, %v2191_v24 }
 0x615   : > { %v2154_v14 = vpop.xlane.xlu0 %2153  ;;  %v2239_v31 = vsel %vm2133_vm12, %v5187_v29, 0.0 }
 0x616   : > { %3810 = vpow2.f32 %v2216_v13  ;;  %v2188_v17 = vsub.f32 %v5132_v0, %v2154_v14  ;;  %2240 = vadd.xlane.f32.xlu0 %v2239_v31 }
 0x618   : > { %v5192_v45 = vpop.eup %3808  ;;  %v2210_v2 = vmul.f32 1.442695, %v2188_v17 }
 0x619   : > { %v2142_v33 = vpop.xlane.xlu1 %2141  ;;  %v2166_v19 = vpop.xlane.xlu2 %2165  ;;  %v2254_v11 = vsel %vm2133_vm12, %v5192_v45, 0.0 }
 0x61a   : > { %v2184_v12 = vsub.f32 %v5109_v23, %v2142_v33  ;;  %v2192_v49 = vsub.f32 %v5138_v47, %v2166_v19  ;;  %3812 = vpow2.f32 %v2210_v2  ;;  %2255 = vadd.xlane.f32.xlu1 %v2254_v11 }
 0x61c   : > { %v5198_v41 = vpop.eup %3810  ;;  %v2202_v3 = vmul.f32 1.442695, %v2184_v12  ;;  %v2218_v54 = vmul.f32 1.442695, %v2192_v49 }
 0x61d   : > { %v2257_v0 = vsel %vm2133_vm12, %v5198_v41, 0.0 }
 0x61e   : > { %3814 = vpow2.f32 %v2202_v3  ;;  %2258 = vadd.xlane.f32.xlu2 %v2257_v0 }
 0x61f   : > { %3816 = vpow2.f32 %v2218_v54 }
 0x620   : > { %v5202_v6 = vpop.eup %3812 }
 0x621   : > { %v2157_v32 = vpop.xlane.xlu1 %2156  ;;  %v2181_v44 = vpop.xlane.xlu2 %2180  ;;  %v2248_v23 = vsel %vm2133_vm12, %v5202_v6, 0.0 }
 0x622   : > { %v2189_v47 = vsub.f32 %v5144_v61, %v2157_v32  ;;  %v2197_v8 = vsub.f32 %v5146_v9, %v2181_v44  ;;  %v2169_v48 = vpop.xlane.xlu0 %2168  ;;  %2249 = vadd.xlane.f32.xlu1 %v2248_v23 }
 0x623   : > { %v2193_v5 = vsub.f32 %v5148_v63, %v2169_v48 }
 0x624   : > { %v5209_v40 = vpop.eup %3814  ;;  %v2212_v25 = vmul.f32 1.442695, %v2189_v47  ;;  %v2228_v34 = vmul.f32 1.442695, %v2197_v8 }
 0x625   : > { %v5211_v27 = vpop.eup %3816  ;;  %v2220_v59 = vmul.f32 1.442695, %v2193_v5  ;;  %v2236_v52 = vsel %vm2133_vm12, %v5209_v40, 0.0 }
 0x626   : > { %3818 = vpow2.f32 %v2212_v25  ;;  %2237 = vadd.xlane.f32.xlu2 %v2236_v52  ;;  %v2260_v61 = vsel %vm2133_vm12, %v5211_v27, 0.0 }
 0x627   : > { %3820 = vpow2.f32 %v2228_v34  ;;  %2261 = vadd.xlane.f32.xlu0 %v2260_v61 }
 0x628   : > { %3822 = vpow2.f32 %v2220_v59 }
 0x629   : > { %v2178_v9 = vpop.xlane.xlu1 %2177 }
 0x62a   : > { %v2196_v63 = vsub.f32 %v5134_v43, %v2178_v9 }
 0x62c   : > { %v5218_v37 = vpop.eup %3818  ;;  %v2226_v22 = vmul.f32 1.442695, %v2196_v63 }
 0x62d   : > { %v5220_v51 = vpop.eup %3820  ;;  %v2251_v35 = vsel %vm2133_vm12, %v5218_v37, 0.0 }
 0x62e   : > { %v5224_v28 = vpop.eup %3822  ;;  %3824 = vpow2.f32 %v2226_v22  ;;  %2252 = vadd.xlane.f32.xlu2 %v2251_v35  ;;  %v2275_v56 = vsel %vm2133_vm12, %v5220_v51, 0.0 }
 0x62f   : > { %2276 = vadd.xlane.f32.xlu0 %v2275_v56  ;;  %v2263_v39 = vsel %vm2133_vm12, %v5224_v28, 0.0 }
 0x630   : > { %2264 = vadd.xlane.f32.xlu1 %v2263_v39 }
 0x634   : > { %v5230_v43 = vpop.eup %3824 }
 0x635   : > { %v2272_v1 = vsel %vm2133_vm12, %v5230_v43, 0.0 }
 0x636   : > { %2273 = vadd.xlane.f32.xlu2 %v2272_v1 }
 0x66d   : > { %v2232_v4 = vpop.xlane.xlu0 %2231 }
 0x66e   : > { %3826 = vrcp.f32 %v2232_v4 }
 0x671   : > { %v2244_v38 = vpop.xlane.xlu2 %2243 }
 0x672   : > { %3828 = vrcp.f32 %v2244_v38 }
 0x674   : > { %v3827_v7 = vpop.eup %3826 }
 0x675   : > { %v2235_v30 = vpop.xlane.xlu1 %2234  ;;  %v2294_v26 = vmul.f32 %v3827_v7, %v5158_v50 }
 0x676   : > { %3830 = vrcp.f32 %v2235_v30 }
 0x677   : > { %v2310_v36 = vpack.c.bf16 %v2294_v26, %v2294_v26 }
 0x678   : > { %v3829_v21 = vpop.eup %3828 }
 0x679   : > { %v2247_v55 = vpop.xlane.xlu0 %2246  ;;  %v2298_v24 = vmul.f32 %v3829_v21, %v5162_v20  ;;  %v2338_v17 = vunpack.c.l.b16 %v2310_v36 }
 0x67a   : > { %3832 = vrcp.f32 %v2247_v55 }
 0x67b   : > { %v2314_v2 = vpack.c.bf16 %v2298_v24, %v2298_v24 }
 0x67c   : > { %v3831_v60 = vpop.eup %3830 }
 0x67d   : > { %v2295_v13 = vmul.f32 %v3831_v60, %v5166_v10  ;;  %v2379_v49 = vunpack.c.l.b16 %v2314_v2 }
 0x67f   : > { %v2311_v14 = vpack.c.bf16 %v2295_v13, %v2295_v13 }
 0x680   : > { %v3833_v31 = vpop.eup %3832 }
 0x681   : > { %v2339_v33 = vunpack.c.l.b16 %v2311_v14  ;;  %v2299_v19 = vmul.f32 %v3833_v31, %v5171_v46  ;;  %v2268_v11 = vpop.xlane.xlu0 %2267 }
 0x682   : > { %3834 = vrcp.f32 %v2268_v11 }
 0x683   : > { %v2315_v12 = vpack.c.bf16 %v2299_v19, %v2299_v19  ;;  %v2342_v50 = vpack.c.b16 %v2339_v33, %v2338_v17 }
 0x685   : > { %v2380_v3 = vunpack.c.l.b16 %v2315_v12  ;;  %v2271_v54 = vpop.xlane.xlu1 %2270  ;;  %3426 = vmatmul.msk.bf16.vlgmr.msrb.gmra.mxu2 %vm2133_vm12, %v2342_v50 }
 0x686   : > { %3836 = vrcp.f32 %v2271_v54 }
 0x687   : > { %v2383_v20 = vpack.c.b16 %v2380_v3, %v2379_v49 }
 0x688   : > { %v3835_v0 = vpop.eup %3834 }
 0x689   : > { %v2306_v10 = vmul.f32 %v3835_v0, %v5177_v53  ;;  %3432 = vmatmul.msk.bf16.vlgmr.msra.gmra.mxu3 %vm2133_vm12, %v2383_v20  ;;  %v2241_v5 = vpop.xlane.xlu0 %2240 }
 0x68b   : > { %v2322_v44 = vpack.c.bf16 %v2306_v10, %v2306_v10 }
 0x68c   : > { %v3837_v32 = vpop.eup %3836 }
 0x68d   : > { %v2307_v46 = vmul.f32 %v3837_v32, %v5182_v57  ;;  %v2256_v23 = vpop.xlane.xlu1 %2255  ;;  %v2461_v8 = vunpack.c.l.b16 %v2322_v44 }
 0x68e   : > { %3838 = vrcp.f32 %v2256_v23 }
 0x68f   : > { %v2323_v47 = vpack.c.bf16 %v2307_v46, %v2307_v46 }
 0x691   : > { %v2462_v48 = vunpack.c.l.b16 %v2323_v47  ;;  %v2259_v25 = vpop.xlane.xlu2 %2258 }
 0x692   : > { %3840 = vrcp.f32 %v2259_v25 }
 0x693   : > { %v2465_v34 = vpack.c.b16 %v2462_v48, %v2461_v8  ;;  %3842 = vrcp.f32 %v2241_v5 }
 0x694   : > { %v3839_v59 = vpop.eup %3838 }
 0x695   : > { %v2302_v52 = vmul.f32 %v3839_v59, %v5192_v45  ;;  %3444 = vmatmul.msk.bf16.vlgmr.msra.gmra.mxu1 %vm2133_vm12, %v2465_v34  ;;  %v2250_v63 = vpop.xlane.xlu1 %2249 }
 0x697   : > { %v2318_v53 = vpack.c.bf16 %v2302_v52, %v2302_v52 }
 0x698   : > { %v3841_v61 = vpop.eup %3840 }
 0x699   : > { %v2303_v9 = vmul.f32 %v3841_v61, %v5198_v41  ;;  %v2238_v57 = vpop.xlane.xlu2 %2237  ;;  %v3843_v22 = vpop.eup %3842  ;;  %v2420_v39 = vunpack.c.l.b16 %v2318_v53 }
 0x69a   : > { %3844 = vrcp.f32 %v2238_v57  ;;  %v2262_v35 = vpop.xlane.xlu0 %2261  ;;  %v2297_v15 = vmul.f32 %v3843_v22, %v5187_v29 }
 0x69b   : > { %v2319_v56 = vpack.c.bf16 %v2303_v9, %v2303_v9  ;;  %3846 = vrcp.f32 %v2250_v63 }
 0x69c   : > { %3848 = vrcp.f32 %v2262_v35  ;;  %v2313_v41 = vpack.c.bf16 %v2297_v15, %v2297_v15 }
 0x69d   : > { %v2421_v1 = vunpack.c.l.b16 %v2319_v56 }
 0x69e   : > { %v2341_v21 = vunpack.c.l.b16 %v2313_v41 }
 0x69f   : > { %v2424_v16 = vpack.c.b16 %v2421_v1, %v2420_v39 }
 0x6a0   : > { %v3845_v45 = vpop.eup %3844 }
 0x6a1   : > { %v2253_v18 = vpop.xlane.xlu2 %2252  ;;  %3438 = vmatmul.msk.bf16.vlgmr.msrb.gmra.mxu0 %vm2133_vm12, %v2424_v16  ;;  %v2296_v4 = vmul.f32 %v3845_v45, %v5209_v40  ;;  %v3847_v58 = vpop.eup %3846 }
 0x6a2   : > { %3850 = vrcp.f32 %v2253_v18  ;;  %v2277_v38 = vpop.xlane.xlu0 %2276  ;;  %v3849_v26 = vpop.eup %3848  ;;  %v2300_v29 = vmul.f32 %v3847_v58, %v5202_v6 }
 0x6a3   : > { %3852 = vrcp.f32 %v2277_v38  ;;  %v2265_v30 = vpop.xlane.xlu1 %2264  ;;  %v2312_v7 = vpack.c.bf16 %v2296_v4, %v2296_v4  ;;  %v2304_v36 = vmul.f32 %v3849_v26, %v5211_v27 }
 0x6a4   : > { %3854 = vrcp.f32 %v2265_v30  ;;  %v2316_v31 = vpack.c.bf16 %v2300_v29, %v2300_v29 }
 0x6a5   : > { %v2340_v55 = vunpack.c.l.b16 %v2312_v7  ;;  %v2320_v19 = vpack.c.bf16 %v2304_v36, %v2304_v36 }
 0x6a6   : > { %v2381_v11 = vunpack.c.l.b16 %v2316_v31 }
 0x6a7   : > { %v2343_v60 = vpack.c.b16 %v2341_v21, %v2340_v55  ;;  %v2422_v49 = vunpack.c.l.b16 %v2320_v19 }
 0x6a8   : > { %v3851_v24 = vpop.eup %3850 }
 0x6a9   : > { %v3853_v13 = vpop.eup %3852  ;;  %v2274_v14 = vpop.xlane.xlu2 %2273  ;;  %3427 = vmatmul.msk.bf16.gmra.mxu2 %vm2133_vm12, %v2343_v60  ;;  %v2301_v40 = vmul.f32 %v3851_v24, %v5218_v37 }
 0x6aa   : > { %v3855_v17 = vpop.eup %3854  ;;  %3856 = vrcp.f32 %v2274_v14  ;;  %v2309_v50 = vmul.f32 %v3853_v13, %v5220_v51 }
 0x6ab   : > { %v2317_v2 = vpack.c.bf16 %v2301_v40, %v2301_v40  ;;  %v2305_v33 = vmul.f32 %v3855_v17, %v5224_v28 }
 0x6ac   : > { %v2325_v0 = vpack.c.bf16 %v2309_v50, %v2309_v50 }
 0x6ad   : > { %v2382_v12 = vunpack.c.l.b16 %v2317_v2  ;;  %v2321_v6 = vpack.c.bf16 %v2305_v33, %v2305_v33 }
 0x6ae   : > { %v2464_v32 = vunpack.c.l.b16 %v2325_v0 }
 0x6af   : > { %v2384_v27 = vpack.c.b16 %v2382_v12, %v2381_v11  ;;  %v2423_v3 = vunpack.c.l.b16 %v2321_v6 }
 0x6b0   : > { %v3857_v54 = vpop.eup %3856 }
 0x6b1   : > { %3433 = vmatmul.msk.bf16.gmra.mxu3 %vm2133_vm12, %v2384_v27  ;;  %v2425_v20 = vpack.c.b16 %v2423_v3, %v2422_v49  ;;  %v2308_v37 = vmul.f32 %v3857_v54, %v5230_v43 }
 0x6b3   : > { %3439 = vmatmul.msk.bf16.gmra.mxu0 %vm2133_vm12, %v2425_v20  ;;  %v2324_v10 = vpack.c.bf16 %v2308_v37, %v2308_v37 }
 0x6b5   : > { %v2463_v28 = vunpack.c.l.b16 %v2324_v10 }
 0x6b7   : > { %v2466_v44 = vpack.c.b16 %v2464_v32, %v2463_v28 }
 0x6b9   : > { %3445 = vmatmul.msk.bf16.gmra.mxu1 %vm2133_vm12, %v2466_v44 }
 0x708   : > { %v2365_v8 = vpop.f32.mrf.mxu2 }
 0x709   : > { %v2500_v59 = vrot.slane %v2365_v8, 4 }
 0x70c   : > { %v2406_v46 = vpop.f32.mrf.mxu3 }
 0x70d   : > { %v2512_v23 = vrot.slane %v2406_v46, 4 }
 0x710   : > { %v2367_v4 = vpop.f32.mrf.mxu2 }
 0x711   : > { %v2556_v60 = vrot.slane %v2367_v4, 4 }
 0x712   : > { %v2488_v51 = vpop.f32.mrf.mxu1 }
 0x713   : > { %v2510_v47 = vrot.slane %v2488_v51, 4  ;;  %v2513_v48 = vsel %vm1496_vm10, %v2488_v51, %v2512_v23 }
 0x714   : > { %v2408_v43 = vpop.f32.mrf.mxu3  ;;  %v2521_v34 = vperm.slane %v2513_v48, %v4784_v62 }
 0x715   : > { %v2511_v25 = vsel %vm1496_vm10, %v2510_v47, %v2406_v46  ;;  %v2568_v61 = vrot.slane %v2408_v43, 4 }
 0x716   : > { %v2517_v53 = vperm.slane %v2511_v25, %v4784_v62  ;;  %v2534_v22 = vrot.slane %v2521_v34, 4 }
 0x718   : > { %v2522_v15 = vrot.slane %v2517_v53, 4 }
 0x71a   : > { %v2490_v5 = vpop.f32.mrf.mxu1 }
 0x71b   : > { %v2566_v52 = vrot.slane %v2490_v5, 4  ;;  %v2569_v56 = vsel %vm1496_vm10, %v2490_v5, %v2568_v61 }
 0x71c   : > { %v2577_v58 = vperm.slane %v2569_v56, %v4784_v62 }
 0x71d   : > { %v2567_v1 = vsel %vm1496_vm10, %v2566_v52, %v2408_v43 }
 0x71e   : > { %v2447_v9 = vpop.f32.mrf.mxu0  ;;  %v2573_v26 = vperm.slane %v2567_v1, %v4784_v62  ;;  %v2590_v17 = vrot.slane %v2577_v58, 4 }
 0x71f   : > { %v2498_v57 = vrot.slane %v2447_v9, 4  ;;  %v2501_v63 = vsel %vm1496_vm10, %v2447_v9, %v2500_v59 }
 0x720   : > { %v2509_v35 = vperm.slane %v2501_v63, %v4784_v62  ;;  %v2578_v31 = vrot.slane %v2573_v26, 4 }
 0x721   : > { %v2499_v39 = vsel %vm1496_vm10, %v2498_v57, %v2365_v8 }
 0x722   : > { %v2505_v16 = vperm.slane %v2499_v39, %v4784_v62  ;;  %v2535_v45 = vsel %vm1496_vm10, %v2534_v22, %v2509_v35  ;;  %v2536_v18 = vrot.slane %v2509_v35, 4 }
 0x723   : > { %v2541_v41 = vperm.slane %v2535_v45, %v4818_v42 }
 0x724   : > { %v2523_v38 = vsel %vm1496_vm10, %v2522_v15, %v2505_v16  ;;  %v2524_v30 = vrot.slane %v2505_v16, 4  ;;  %v2537_v7 = vsel %vm1496_vm10, %v2521_v34, %v2536_v18 }
 0x725   : > { %v2529_v55 = vperm.slane %v2523_v38, %v4818_v42  ;;  %v2545_v21 = vperm.slane %v2537_v7, %v4818_v42  ;;  %v2550_v29 = vrot.slane %v2541_v41, 4 }
 0x726   : > { %v2525_v36 = vsel %vm1496_vm10, %v2517_v53, %v2524_v30  ;;  %v2449_v24 = vpop.f32.mrf.mxu0 }
 0x727   : > { %v2533_v13 = vperm.slane %v2525_v36, %v4818_v42  ;;  %v2546_v14 = vrot.slane %v2529_v55, 4  ;;  %v2552_v40 = vrot.slane %v2545_v21, 4  ;;  %v2554_v2 = vrot.slane %v2449_v24, 4 }
 0x728   : > { %v2557_v33 = vsel %vm1496_vm10, %v2449_v24, %v2556_v60  ;;  %v2551_v11 = vsel %vm1496_vm10, 0.0, %v2550_v29 }
 0x729   : > { %v2548_v19 = vrot.slane %v2533_v13, 4  ;;  %v2553_v12 = vsel %vm1496_vm10, 0.0, %v2552_v40  ;;  %v2733_v6 = vsel %vm1496_vm10, %v2552_v40, %v2541_v41  ;;  %v2555_v49 = vsel %vm1496_vm10, %v2554_v2, %v2367_v4 }
 0x72a   : > { %v5283_v50 = vperm.slane %v2733_v6, %v4784_v62  ;;  %v2738_v27 = vrot.slane %v2553_v12, 4  ;;  %v2565_v3 = vperm.slane %v2557_v33, %v4784_v62  ;;  %v2547_v54 = vsel %vm1496_vm10, 0.0, %v2546_v14 }
 0x72b   : > { %v2549_v20 = vsel %vm1496_vm10, 0.0, %v2548_v19  ;;  %v2722_v37 = vsel %vm1496_vm10, %v2548_v19, %v2529_v55  ;;  %v2561_v0 = vperm.slane %v2555_v49, %v4784_v62 }
 0x72c   : > { %v2727_v10 = vrot.slane %v2549_v20, 4  ;;  %v2739_v28 = vsel %vm1496_vm10, %v2738_v27, %v2551_v11  ;;  %v2758_v32 = vrot.slane %v5283_v50, 4  ;;  %v2591_v44 = vsel %vm1496_vm10, %v2590_v17, %v2565_v3  ;;  %v2370_v46 = vpop.f32.mrf.mxu2 }
 0x72d   : > { %v5295_v51 = vperm.slane %v2739_v28, %v4784_v62  ;;  %v2579_v23 = vsel %vm1496_vm10, %v2578_v31, %v2561_v0  ;;  %v2580_v47 = vrot.slane %v2561_v0, 4  ;;  %v2592_v8 = vrot.slane %v2565_v3, 4 }
 0x72e   : > { %v2585_v48 = vperm.slane %v2579_v23, %v4818_v42  ;;  %v2597_v5 = vperm.slane %v2591_v44, %v4818_v42  ;;  %v2612_v25 = vrot.slane %v2370_v46, 4  ;;  %v5301_v43 = vperm.slane %v2722_v37, %v4784_v62 }
 0x72f   : > { %v2581_v34 = vsel %vm1496_vm10, %v2573_v26, %v2580_v47  ;;  %v2593_v59 = vsel %vm1496_vm10, %v2577_v58, %v2592_v8  ;;  %v2728_v52 = vsel %vm1496_vm10, %v2727_v10, %v2547_v54  ;;  %v2759_v53 = vsel %vm1496_vm10, %v5295_v51, %v2758_v32 }
 0x730   : > { %v2589_v61 = vperm.slane %v2581_v34, %v4818_v42  ;;  %v2601_v9 = vperm.slane %v2593_v59, %v4818_v42  ;;  %v2602_v57 = vrot.slane %v2585_v48, 4  ;;  %v2606_v63 = vrot.slane %v2597_v5, 4  ;;  %v2452_v22 = vpop.f32.mrf.mxu0 }
 0x731   : > { %v2610_v35 = vrot.slane %v2452_v22, 4  ;;  %v2613_v56 = vsel %vm1496_vm10, %v2452_v22, %v2612_v25  ;;  %v5312_v39 = vperm.slane %v2728_v52, %v4784_v62  ;;  %v2746_v1 = vrot.slane %v5301_v43, 4 }
 0x732   : > { %v2603_v15 = vsel %vm1496_vm10, 0.0, %v2602_v57  ;;  %v2604_v16 = vrot.slane %v2589_v61, 4  ;;  %v2607_v45 = vsel %vm1496_vm10, 0.0, %v2606_v63  ;;  %v2608_v18 = vrot.slane %v2601_v9, 4 }
 0x733   : > { %v2611_v4 = vsel %vm1496_vm10, %v2610_v35, %v2370_v46  ;;  %v2621_v41 = vperm.slane %v2613_v56, %v4784_v62  ;;  %v2747_v58 = vsel %vm1496_vm10, %v5312_v39, %v2746_v1  ;;  %v5322_v38 = vperm.slane %v2759_v53, %v4818_v42 }
 0x734   : > { %v2605_v30 = vsel %vm1496_vm10, 0.0, %v2604_v16  ;;  %v2609_v7 = vsel %vm1496_vm10, 0.0, %v2608_v18  ;;  %v2776_v26 = vsel %vm1496_vm10, %v2604_v16, %v2585_v48  ;;  %v2787_v55 = vsel %vm1496_vm10, %v2608_v18, %v2597_v5  ;;  %v2372_v21 = vpop.f32.mrf.mxu2  ;;  %v2411_v29 = vpop.f32.mrf.mxu3 }
 0x735   : > { %v2781_v60 = vrot.slane %v2605_v30, 4  ;;  %v5329_v36 = vperm.slane %v2787_v55, %v4784_v62  ;;  %v2792_v24 = vrot.slane %v2609_v7, 4  ;;  %v2617_v13 = vperm.slane %v2611_v4, %v4784_v62 }
 0x736   : > { %v2648_v14 = vrot.slane %v2621_v41, 4  ;;  %v2668_v40 = vrot.slane %v2372_v21, 4  ;;  %v2624_v31 = vrot.slane %v2411_v29, 4  ;;  %v2493_v17 = vpop.f32.mrf.mxu1  ;;  %v5333_v2 = vperm.slane %v2747_v58, %v4818_v42 }
 0x737   : > { %v2793_v33 = vsel %vm1496_vm10, %v2792_v24, %v2607_v45  ;;  %v2812_v19 = vrot.slane %v5329_v36, 4  ;;  %v2636_v11 = vrot.slane %v2617_v13, 4  ;;  %v2622_v12 = vrot.slane %v2493_v17, 4 }
 0x738   : > { %v5338_v6 = vperm.slane %v2793_v33, %v4784_v62  ;;  %v2625_v27 = vsel %vm1496_vm10, %v2493_v17, %v2624_v31  ;;  %v2454_v49 = vpop.f32.mrf.mxu0  ;;  %v2772_v3 = vrot.slane %v5322_v38, 4  ;;  %v5343_v54 = vperm.slane %v2776_v26, %v4784_v62 }
 0x739   : > { %v2623_v20 = vsel %vm1496_vm10, %v2622_v12, %v2411_v29  ;;  %v2633_v37 = vperm.slane %v2625_v27, %v4784_v62  ;;  %v2666_v0 = vrot.slane %v2454_v49, 4  ;;  %v2669_v10 = vsel %vm1496_vm10, %v2454_v49, %v2668_v40 }
 0x73a   : > { %v2629_v28 = vperm.slane %v2623_v20, %v4784_v62  ;;  %v2677_v32 = vperm.slane %v2669_v10, %v4784_v62  ;;  %v5352_v44 = vsel %vm1496_vm10, %v2772_v3, %v5333_v2  ;;  %v2782_v46 = vsel %vm1496_vm10, %v2781_v60, %v2603_v15 }
 0x73b   : > { %v2646_v23 = vrot.slane %v2633_v37, 4  ;;  %v2649_v47 = vsel %vm1496_vm10, %v2633_v37, %v2648_v14  ;;  %v2667_v8 = vsel %vm1496_vm10, %v2666_v0, %v2372_v21  ;;  %v5358_v48 = vperm.slane %v2782_v46, %v4784_v62 }
 0x73c   : > { %v2634_v5 = vrot.slane %v2629_v28, 4  ;;  %v2637_v25 = vsel %vm1496_vm10, %v2629_v28, %v2636_v11  ;;  %v2657_v34 = vperm.slane %v2649_v47, %v4818_v42  ;;  %v2673_v59 = vperm.slane %v2667_v8, %v4784_v62  ;;  %v2413_v52 = vpop.f32.mrf.mxu3 }
 0x73d   : > { %v2645_v53 = vperm.slane %v2637_v25, %v4818_v42  ;;  %v2647_v61 = vsel %vm1496_vm10, %v2646_v23, %v2621_v41  ;;  %v2704_v9 = vrot.slane %v2677_v32, 4  ;;  %v2680_v57 = vrot.slane %v2413_v52, 4 }
 0x73e   : > { %v2635_v63 = vsel %vm1496_vm10, %v2634_v5, %v2617_v13  ;;  %v2653_v22 = vperm.slane %v2647_v61, %v4818_v42  ;;  %v2664_v35 = vrot.slane %v2657_v34, 4  ;;  %v2692_v56 = vrot.slane %v2673_v59, 4  ;;  %v2495_v1 = vpop.f32.mrf.mxu1 }
 0x73f   : > { %v5368_v15 = vperm.slane %v2635_v63, %v4818_v42  ;;  %v2660_v16 = vrot.slane %v2645_v53, 4  ;;  %v2678_v45 = vrot.slane %v2495_v1, 4  ;;  %v2681_v18 = vsel %vm1496_vm10, %v2495_v1, %v2680_v57 }
 0x740   : > { %v2662_v4 = vrot.slane %v2653_v22, 4  ;;  %v2665_v58 = vsel %vm1496_vm10, 0.0, %v2664_v35  ;;  %v2841_v41 = vsel %vm1496_vm10, %v2664_v35, %v2653_v22  ;;  %v2689_v30 = vperm.slane %v2681_v18, %v4784_v62 }
 0x741   : > { %v2658_v7 = vrot.slane %v5368_v15, 4  ;;  %v5376_v26 = vsel %vm1496_vm10, 0.0, %v2660_v16  ;;  %v2830_v55 = vsel %vm1496_vm10, %v2660_v16, %v5368_v15  ;;  %v5381_v21 = vperm.slane %v2841_v41, %v4784_v62 }
 0x742   : > { %v2663_v29 = vsel %vm1496_vm10, 0.0, %v2662_v4  ;;  %v2835_v60 = vrot.slane %v5376_v26, 4  ;;  %v2846_v24 = vrot.slane %v2665_v58, 4  ;;  %v2679_v13 = vsel %vm1496_vm10, %v2678_v45, %v2413_v52 }
 0x743   : > { %v2866_v14 = vrot.slane %v5381_v21, 4  ;;  %v2685_v40 = vperm.slane %v2679_v13, %v4784_v62  ;;  %v2702_v31 = vrot.slane %v2689_v30, 4  ;;  %v2705_v17 = vsel %vm1496_vm10, %v2689_v30, %v2704_v9 }
 0x744   : > { %v2847_v33 = vsel %vm1496_vm10, %v2846_v24, %v2663_v29  ;;  %v2713_v11 = vperm.slane %v2705_v17, %v4818_v42  ;;  %v2800_v12 = vrot.slane %v5343_v54, 4  ;;  %v2813_v27 = vsel %vm1496_vm10, %v5338_v6, %v2812_v19 }
 0x745   : > { %v5395_v49 = vperm.slane %v2847_v33, %v4784_v62  ;;  %v2690_v3 = vrot.slane %v2685_v40, 4  ;;  %v2693_v20 = vsel %vm1496_vm10, %v2685_v40, %v2692_v56  ;;  %v2703_v37 = vsel %vm1496_vm10, %v2702_v31, %v2677_v32 }
 0x746   : > { %v2701_v0 = vperm.slane %v2693_v20, %v4818_v42  ;;  %v2709_v10 = vperm.slane %v2703_v37, %v4818_v42  ;;  %v2720_v28 = vrot.slane %v2713_v11, 4  ;;  %v2801_v46 = vsel %vm1496_vm10, %v5358_v48, %v2800_v12 }
 0x747   : > { %v2691_v23 = vsel %vm1496_vm10, %v2690_v3, %v2673_v59  ;;  %v2809_v19 = vperm.slane %v2801_v46, %v4818_v42  ;;  %v2821_v47 = vperm.slane %v2813_v27, %v4818_v42  ;;  %v2774_v8 = vrot.slane %v5333_v2, 4 }
 0x748   : > { %v2697_v5 = vperm.slane %v2691_v23, %v4818_v42  ;;  %v2716_v25 = vrot.slane %v2701_v0, 4  ;;  %v2718_v32 = vrot.slane %v2709_v10, 4  ;;  %v2721_v34 = vsel %vm1496_vm10, 0.0, %v2720_v28 }
 0x749   : > { %v2895_v52 = vsel %vm1496_vm10, %v2720_v28, %v2709_v10  ;;  %v2900_v53 = vrot.slane %v2721_v34, 4  ;;  %v2826_v61 = vrot.slane %v2821_v47, 4  ;;  %v2775_v9 = vsel %vm1496_vm10, %v5322_v38, %v2774_v8 }
 0x74a   : > { %v2714_v59 = vrot.slane %v2697_v5, 4  ;;  %v2717_v57 = vsel %vm1496_vm10, 0.0, %v2716_v25  ;;  %v2719_v63 = vsel %vm1496_vm10, 0.0, %v2718_v32  ;;  %v2884_v2 = vsel %vm1496_vm10, %v2716_v25, %v2697_v5 }
 0x74b   : > { %v2889_v22 = vrot.slane %v2717_v57, 4  ;;  %v5416_v35 = vperm.slane %v2895_v52, %v4784_v62  ;;  %v2901_v56 = vsel %vm1496_vm10, %v2900_v53, %v2719_v63  ;;  %v2827_v1 = vsel %vm1496_vm10, %v2826_v61, %v2809_v19 }
 0x74c   : > { %v2715_v15 = vsel %vm1496_vm10, 0.0, %v2714_v59  ;;  %v5422_v16 = vperm.slane %v2901_v56, %v4784_v62  ;;  %v3768_v38 = vpack.i.bf16 %v2827_v1, %v5352_v44  ;;  %v2828_v45 = vrot.slane %v2809_v19, 4 }
 0x74d   : > { %v2920_v18 = vrot.slane %v5416_v35, 4  ;;  %v2744_v4 = vrot.slane %v5312_v39, 4  ;;  %v2756_v58 = vrot.slane %v5295_v51, 4  ;;  %v2798_v41 = vrot.slane %v5358_v48, 4 }
 0x74e   : > { %3769 = vrot.lane.b32.xlu2 %v3768_v38, %s4187_s12  ;;  %v2829_v30 = vsel %vm1496_vm10, %v2821_v47, %v2828_v45  ;;  %v2810_v29 = vrot.slane %v5338_v6, 4  ;;  %v2659_v24 = vsel %vm1496_vm10, 0.0, %v2658_v7  ;;  %v2834_v13 = vperm.slane %v2830_v55, %v4784_v62 }
 0x74f   : > { %v3773_v44 = vpack.i.bf16 %v2829_v30, %v2775_v9  ;;  %v2745_v40 = vsel %vm1496_vm10, %v2744_v4, %v5301_v43  ;;  %v2757_v39 = vsel %vm1496_vm10, %v2756_v58, %v5283_v50  ;;  %v2799_v51 = vsel %vm1496_vm10, %v2798_v41, %v5343_v54 }
 0x750   : > { %v2751_v48 = vperm.slane %v2745_v40, %v4818_v42  ;;  %v2763_v31 = vperm.slane %v2757_v39, %v4818_v42  ;;  %v2805_v6 = vperm.slane %v2799_v51, %v4818_v42  ;;  %v2811_v7 = vsel %vm1496_vm10, %v2810_v29, %v5329_v36  ;;  %v3524_v39 = vld [vmem:[#allocation13 + $0x30] sm:$0xff]  ;;  %v3522_v51 = vld [vmem:[#allocation13 + $0x20] sm:$0xff] }
 0x751   : > { %3774 = vrot.lane.b32.xlu0 %v3773_v44, %s4189_s14  ;;  %v2817_v55 = vperm.slane %v2811_v7, %v4818_v42  ;;  %v2836_v50 = vsel %vm1496_vm10, %v2835_v60, %v2659_v24  ;;  %v2854_v43 = vrot.slane %v2834_v13, 4  ;;  %v2867_v54 = vsel %vm1496_vm10, %v5395_v49, %v2866_v14  ;;  %v3518_v7 = vld [vmem:[#allocation13] sm:$0xff] }
 0x752   : > { %v2768_v17 = vrot.slane %v2763_v31, 4  ;;  %v2770_v33 = vrot.slane %v2751_v48, 4  ;;  %v2824_v11 = vrot.slane %v2805_v6, 4  ;;  %v2840_v12 = vperm.slane %v2836_v50, %v4784_v62 }
 0x753   : > { %v2822_v27 = vrot.slane %v2817_v55, 4  ;;  %v2875_v36 = vperm.slane %v2867_v54, %v4818_v42  ;;  %v2888_v3 = vperm.slane %v2884_v2, %v4784_v62  ;;  %v2890_v20 = vsel %vm1496_vm10, %v2889_v22, %v2715_v15 }
 0x754   : > { %v2771_v26 = vsel %vm1496_vm10, %v2763_v31, %v2770_v33  ;;  %v2825_v60 = vsel %vm1496_vm10, %v2817_v55, %v2824_v11  ;;  %v2855_v37 = vsel %vm1496_vm10, %v2840_v12, %v2854_v43  ;;  %v2894_v14 = vperm.slane %v2890_v20, %v4784_v62  ;;  %v3520_v31 = vld [vmem:[#allocation13 + $0x10] sm:$0xff] }
 0x755   : > { %v3763_v0 = vpack.i.bf16 %v2825_v60, %v2771_v26  ;;  %v2863_v10 = vperm.slane %v2855_v37, %v4818_v42  ;;  %v2880_v28 = vrot.slane %v2875_v36, 4  ;;  %v2908_v46 = vrot.slane %v2888_v3, 4 }
 0x756   : > { %v2921_v23 = vsel %vm1496_vm10, %v5422_v16, %v2920_v18  ;;  %v2852_v19 = vrot.slane %v2840_v12, 4  ;;  %v2864_v47 = vrot.slane %v5395_v49, 4  ;;  %v2906_v8 = vrot.slane %v2894_v14, 4 }
 0x757   : > { %3764 = vrot.lane.b32.xlu1 %v3763_v0, %s4188_s17  ;;  %v2881_v5 = vsel %vm1496_vm10, %v2880_v28, %v2863_v10  ;;  %v2909_v25 = vsel %vm1496_vm10, %v2894_v14, %v2908_v46  ;;  %v2929_v62 = vperm.slane %v2921_v23, %v4818_v42  ;;  %v2882_v32 = vrot.slane %v2863_v10, 4 }
 0x758   : > { %v2917_v34 = vperm.slane %v2909_v25, %v4818_v42  ;;  %v2853_v52 = vsel %vm1496_vm10, %v2852_v19, %v2834_v13  ;;  %v2865_v53 = vsel %vm1496_vm10, %v2864_v47, %v5381_v21  ;;  %v2907_v61 = vsel %vm1496_vm10, %v2906_v8, %v2888_v3 }
 0x759   : > { %v2934_v49 = vrot.slane %v2929_v62, 4  ;;  %v2883_v9 = vsel %vm1496_vm10, %v2875_v36, %v2882_v32  ;;  %v2859_v59 = vperm.slane %v2853_v52, %v4818_v42  ;;  %v2871_v57 = vperm.slane %v2865_v53, %v4818_v42 }
 0x75a   : > { %v2936_v63 = vrot.slane %v2917_v34, 4  ;;  %v2913_v2 = vperm.slane %v2907_v61, %v4818_v42  ;;  %v2918_v22 = vrot.slane %v5422_v16, 4  ;;  %v2769_v56 = vsel %vm1496_vm10, %v2768_v17, %v2751_v48  ;;  %v3521_v48 = vld [vmem:[#allocation13 + $0x18] sm:$0xff] }
 0x75b   : > { %v2935_v1 = vsel %vm1496_vm10, %v2934_v49, %v2917_v34  ;;  %v2876_v15 = vrot.slane %v2871_v57, 4  ;;  %v2878_v21 = vrot.slane %v2859_v59, 4  ;;  %v2823_v38 = vsel %vm1496_vm10, %v2822_v27, %v2805_v6  ;;  %v3519_v6 = vld [vmem:[#allocation13 + $0x8] sm:$0xff]  ;;  %v3793_v49 = vld [vmem:[%s5643_s6] ss:$0 sm:$0xff] }
 0x75c   : > { %v3783_v45 = vpack.i.bf16 %v2935_v1, %v2881_v5  ;;  %v2937_v18 = vsel %vm1496_vm10, %v2929_v62, %v2936_v63  ;;  %v2919_v4 = vsel %vm1496_vm10, %v2918_v22, %v5416_v35  ;;  %v2932_v58 = vrot.slane %v2913_v2, 4  ;;  %v3525_v35 = vld [vmem:[#allocation13 + $0x38] sm:$0xff] }
 0x75d   : > { %v3788_v41 = vpack.i.bf16 %v2937_v18, %v2883_v9  ;;  %v2925_v30 = vperm.slane %v2919_v4, %v4818_v42  ;;  %v2877_v16 = vsel %vm1496_vm10, %v2876_v15, %v2859_v59  ;;  %v2879_v29 = vsel %vm1496_vm10, %v2871_v57, %v2878_v21  ;;  %3070 = vmatpush.bf16.msra.mxu2 %v3525_v35  ;;  %v3523_v42 = vld [vmem:[#allocation13 + $0x28] sm:$0xff] }
 0x75e   : > { %3784 = vrot.lane.b32.xlu0 %v3783_v45, %s4187_s12 }
 0x75f   : > { %3789 = vrot.lane.b32.xlu2 %v3788_v41, %s4189_s14  ;;  %v2930_v24 = vrot.slane %v2925_v30, 4  ;;  %v2933_v13 = vsel %vm1496_vm10, %v2925_v30, %v2932_v58  ;;  %s4058_s14 = scalar_lea.hbm %s5645_s26, 128 }
 0x760   : > { %v3778_v44 = vpack.i.bf16 %v2933_v13, %v2879_v29  ;;  %p4060_p0 = scmp.lt.s32.totalorder %s4058_s14, %s4054_s4 }
 0x761   : > { %v2931_v40 = vsel %vm1496_vm10, %v2930_v24, %v2913_v2  ;;  %3071 = vmatpush.bf16.msra.mxu2 %v3524_v39 }
 0x762   : > { %3779 = vrot.lane.b32.xlu1 %v3778_v44, %s4188_s17  ;;  %p4061_p2 = por %p4060_p0, %p4059_p9 }
 0x764   : > { %p4062_p3 = pnand %p4061_p2, %p4057_p8 }
 0x765   : > { %3072 = vmatpush.bf16.msra.mxu2 %v3523_v42 }
 0x769   : > { %3073 = vmatpush.bf16.msra.mxu2 %v3522_v51 }
 0x76d   : > { %3074 = vmatpush.bf16.msra.mxu2 %v3521_v48 }
 0x771   : > { %3075 = vmatpush.bf16.msra.mxu2 %v3520_v31 }
 0x775   : > { %3076 = vmatpush.bf16.msra.mxu2 %v3519_v6 }
 0x779   : > { %3077 = vmatpush.bf16.msra.mxu2 %v3518_v7 }
 0x7a8   : > { %v3770_v55 = vpop.permute.xlu2 %3769 }
 0x7a9   : > { %v3772_v33 = vunpack.i.h.bf16 %v3770_v55  ;;  %v3771_v11 = vunpack.i.l.bf16 %v3770_v55 }
 0x7b9   : > { %v3790_v10 = vpop.permute.xlu2 %3789 }
 0x7ba   : > { %v3792_v8 = vunpack.i.h.bf16 %v3790_v10  ;;  %v3791_v5 = vunpack.i.l.bf16 %v3790_v10 }
 0x7c3   : > { %v3775_v50 = vpop.permute.xlu0 %3774 }
 0x7c4   : > { %v3777_v12 = vunpack.i.h.bf16 %v3775_v50  ;;  %v3776_v27 = vunpack.i.l.bf16 %v3775_v50 }
 0x7c9   : > { %v3765_v43 = vpop.permute.xlu1 %3764 }
 0x7ca   : > { %v3767_v54 = vunpack.i.h.bf16 %v3765_v43  ;;  %v3766_v17 = vunpack.i.l.bf16 %v3765_v43 }
 0x7cc   : > { %v2986_v36 = vsel %vm1975_vm11, %v2769_v56, %v3766_v17  ;;  %v2987_v3 = vsel %vm1975_vm11, %v2823_v38, %v3767_v54 }
 0x7cd   : > { %v2991_v20 = vsel %vm2990_vm13, %v2986_v36, %v3771_v11  ;;  %v2992_v26 = vsel %vm2990_vm13, %v2987_v3, %v3772_v33 }
 0x7ce   : > { %v2996_v60 = vsel %vm2995_vm14, %v2991_v20, %v3776_v27  ;;  %v2997_v37 = vsel %vm2995_vm14, %v2992_v26, %v3777_v12 }
 0x7cf   : > { %v3000_v14 = vpack.c.bf16 %v2997_v37, %v2996_v60 }
 0x7d0   : > { %v3785_v0 = vpop.permute.xlu0 %3784 }
 0x7d1   : > { %3078 = vmatmul.bf16.vlgmr.msra.gmra.mxu2 %v3000_v14  ;;  %v3787_v19 = vunpack.i.h.bf16 %v3785_v0  ;;  %v3786_v47 = vunpack.i.l.bf16 %v3785_v0 }
 0x7d4   : > { %v3780_v28 = vpop.permute.xlu1 %3779 }
 0x7d5   : > { %v3782_v46 = vunpack.i.h.bf16 %v3780_v28  ;;  %v3781_v23 = vunpack.i.l.bf16 %v3780_v28 }
 0x7d7   : > { %v2988_v25 = vsel %vm1975_vm11, %v2877_v16, %v3781_v23  ;;  %v2989_v62 = vsel %vm1975_vm11, %v2931_v40, %v3782_v46 }
 0x7d8   : > { %v2993_v32 = vsel %vm2990_vm13, %v2988_v25, %v3786_v47  ;;  %v2994_v34 = vsel %vm2990_vm13, %v2989_v62, %v3787_v19 }
 0x7d9   : > { %v2998_v52 = vsel %vm2995_vm14, %v2993_v32, %v3791_v5  ;;  %v2999_v53 = vsel %vm2995_vm14, %v2994_v34, %v3792_v8 }
 0x7da   : > { %v3001_v61 = vpack.c.bf16 %v2999_v53, %v2998_v52 }
 0x7e1   : > { %3083 = vmatmul.bf16.gmra.mxu2 %v3001_v61 }
 0x854   : > { %v3079_v9 = vpop.f32.mrf.mxu2 }
 0x855   : > { %v3080_v59 = vadd.f32 %v3793_v49, %v3079_v9 }
 0x857   : > { %3089 = vst [vmem:[%s4483_s9] sm:$0xff] %v3080_v59 }
 0x85c   : > { %v3081_v57 = vpop.f32.mrf.mxu2 }
 0x85d   : > { %v3082_v63 = vadd.f32 %v3793_v49, %v3081_v57 }
 0x85f   : > { %3090 = vst [vmem:[%s4483_s9 + $0x8] sm:$0xff] %v3082_v63 }
 0x864   : > { %v3084_v2 = vpop.f32.mrf.mxu2 }
 0x865   : > { %v3085_v22 = vadd.f32 %v3793_v49, %v3084_v2 }
 0x867   : > { %3091 = vst [vmem:[%s4483_s9 + $0x10] sm:$0xff] %v3085_v22 }
 0x86c   : > { %v3086_v56 = vpop.f32.mrf.mxu2 }
 0x86d   : > { %v3087_v1 = vadd.f32 %v3793_v49, %v3086_v56 }
 0x86f   : > { %3092 = vst [vmem:[%s4483_s9 + $0x18] sm:$0xff] %v3087_v1 }
 0x870   : > { %4065 = shalt.err (!%p4062_p3)
}
 0x871   : > { %s4192_s5 = smov 128   ;;  %s4193_s9 = smov 8  }
 0x872   : > { %3545 = dma.vmem_to_hbm [thread:$0]  (%p4412_p10), %s3109_s30, 512, %s3111_s15, %s3094_s22, %s4192_s5, %s4192_s5, %s4193_s9  }
 0x873 PF: > { %s5646_s24 = sld [smem:[#allocation22_spill]]  ;;  %p3578_p1 = scmp.ge.s32.totalorder %s4172_s19, 2 }
 0x875   : > { %p3568_p4 = pnand %p3578_p1, %p4418_p7 }
 0x877   : > { %p3569_p12 = pneg %p3568_p4 }
 0x879   : > { %s3125_s6 = sand.u32 1, %s5646_s24  }
 0x87a   : > { %s3126_s3 = scalar_lea.sflag [#allocation6], %s3125_s6 }
 0x87b   : > { %4127 = dma.done.wait (%p3569_p12), %s3126_s3, 512  }
 0x87c   : > { %4129 = vsyncadd (%p3569_p12), %s3126_s3, 4294966784  ;;  %s30_s19 = sadd.s32 1, %s4172_s19   ;;  %s5648_s30 = sld [smem:[#allocation21_spill]] }
 0x87d   : > { %p27_p13 = scmp.ge.s32.totalorder %s30_s19, 6   ;;  %s5649_s27 = sld [smem:[#allocation31_spill]] }
 0x87e   : > { %s5650_s25 = sld [smem:[#allocation23_spill]]  ;;  %s5655_s10 = smov %s4140_s11 }
 0x87f   : > { %s5651_s14 = sld [smem:[#allocation32_spill]]  ;;  %s5657_s12 = smov %s4148_s13 }
 0x880   : > { %s5652_s15 = sld [smem:[#allocation26_spill]]  ;;  %s5659_s16 = smov %s4168_s18 }
 0x881   : > { %s5653_s17 = sld [smem:[#allocation28_spill]] }
 0x882   : > { %s5654_s29 = sld [smem:[#allocation29_spill]] }
 0x883   : > { %s5656_s11 = smov %s5649_s27 }
 0x884   : > { %s5658_s13 = smov %s5650_s25  ;;  %29 = sbr.rel (!%p27_p13) target bundleno = 22 (0x16), region = 141 }
 0x888   : > { %s5660_s18 = smov %s5654_s29 }
 0x889   :  { %3132 = vsyncpa [#allocation5], 1 }
 0x88a   :  { %3134 = vsyncpa [#allocation5 + $0x1], 1 }
 0x88b   :  { %3135 = vsyncpa [#allocation8], 1 }
 0x88c   :  { %3137 = vsyncpa [#allocation8 + $0x1], 1 }
 0x88d   :  { %3138 = vsyncpa [#allocation11], 1 }
 0x88e   :  { %3139 = vsyncpa [#allocation14], 1 }
 0x88f   :  { %3140 = vsyncpa [#allocation6], 1 }
 0x890   :  { %3142 = vsyncpa [#allocation6 + $0x1], 1 }

</bundles_post_ra>
